<compile_context>
chip_gen: v6e
topology: v6e:2x2x1
jax: 0.10.0
libtpu: 0.0.40
codegen_flags: <defaults>
</compile_context>

<pallas_src>
import functools

import numpy as np
import jax
import jax.numpy as jnp
from jax import lax
from jax.experimental import pallas as pl
from jax.experimental.pallas import tpu as pltpu

N_BINS = 15
_LANE = 128
_TR_MAX = 4096                      # rows of the (rows, 128) view per step = 32768 samples
_VMEM_LIMIT = 32 * 1024 * 1024      # safe scoped-VMEM limit on v5e / v6e / v7x


def _round_up(x, m):
    return ((x + m - 1) // m) * m


def _next_pow2(x):
    p = 1
    while p < x:
        p *= 2
    return p


# ----------------------------- kernel 1 -------------------------------------
def _conf_acc_kernel(r_ref, lab_ref, out_ref, *, sub, c_pad, n_valid):
    """Per-sample max-softmax confidence + top-1 accuracy.

    r_ref:   (TR, 128) block of the row-major (N/sub, 128) view of the logits;
             element [rr, j*c_pad + c] == logits[sub*(i*TR + rr) + j, c].
    lab_ref: (sub, TR) int32 labels arranged to match.
    out_ref: (2*sub, TR) f32 -- rows [0, sub) confidence, rows [sub, 2*sub) accuracy.
    """
    i = pl.program_id(0)
    tr = r_ref.shape[0]

    x = r_ref[...].astype(jnp.float32)                 # (TR, 128)
    xt = jnp.transpose(x)                              # (128, TR) -- XLU, native tiles

    col = lax.broadcasted_iota(jnp.int32, (1, tr), 1)
    ids = lax.broadcasted_iota(jnp.int32, (c_pad, tr), 0)

    for j in range(sub):                               # unrolled, sub <= 16
        xj = xt[j * c_pad:(j + 1) * c_pad, :]          # (c_pad, TR), lane-dense
        m = jnp.max(xj, axis=0, keepdims=True)         # (1, TR)
        s = jnp.sum(jnp.exp(xj - m), axis=0, keepdims=True)
        # max(softmax) == 1 / sum(exp(x - max)); approx recip rides the EUP slot.
        conf = pl.reciprocal(s, approx=True)
        # first arg-max on raw logits (monotone w.r.t. softmax, np.argmax ties)
        pred = jnp.min(jnp.where(xj >= m, ids, c_pad), axis=0, keepdims=True)
        acc = (pred == lab_ref[j:j + 1, :]).astype(jnp.float32)
        # zero padded samples so downstream binning / edge-sort ignores them
        valid = (sub * (i * tr + col) + j) < n_valid
        out_ref[j:j + 1, :] = jnp.where(valid, conf, 0.0)
        out_ref[sub + j:sub + j + 1, :] = jnp.where(valid, acc, 0.0)


# ----------------------------- kernel 2 -------------------------------------
def _bin_partial_kernel(ca_ref, edges_ref, out_ref, *, sub):
    """Per-block, per-edge-threshold partial sums via MXU contractions.

    ca_ref:    (2*sub, TK) block: rows [0, sub) confidence, [sub, 2*sub) accuracy.
    edges_ref: (N_BINS+1, 1) f32 bin edges.
    out_ref:   (1, sub, N_BINS+1, 3): for edge e_k the partial
               [count(conf > e_k), sum conf(conf > e_k), sum acc(conf > e_k)].
    """
    nb1 = edges_ref.shape[0]
    tk = ca_ref.shape[1]
    edges = edges_ref[...]                                       # (nb1, 1)
    sel = lax.broadcasted_iota(jnp.int32, (3, tk), 0)

    for j in range(sub):                                         # unrolled, sub <= 16
        conf = ca_ref[j:j + 1, :]                                # (1, TK)
        acc = ca_ref[sub + j:sub + j + 1, :]                     # (1, TK)
        gt = (conf > edges).astype(jnp.float32)                  # (nb1, TK)
        v = jnp.where(sel == 0, 1.0,
                      jnp.where(sel == 1, conf, acc))            # (3, TK): [ones;conf;acc]
        # (nb1, TK) x (3, TK) contracted over lanes on the (otherwise idle) MXU.
        out_ref[0, j] = lax.dot_general(
            gt, v, (((1,), (1,)), ((), ())),
            preferred_element_type=jnp.float32)                  # (nb1, 3)


# ------------------------------ wrapper -------------------------------------
@jax.jit
def adaptive_ece(logits, labels):
    n, c = logits.shape

    # classes per packed row (pad class dim to a power of two >= 8, or to a
    # multiple of 128 for very wide heads); sub samples share one 128-lane row.
    if c >= _LANE:
        c_pad, sub = _round_up(c, _LANE), 1
    else:
        c_pad = max(_next_pow2(c), 8)
        sub = _LANE // c_pad
    lane = sub * c_pad

    if c_pad != c:
        # TODO(synk): class padding materialises a copy of the logits; only hit
        # when C is not already a power of two (<=128) / multiple of 128.
        logits = jnp.pad(logits, ((0, 0), (0, c_pad - c)), constant_values=-1e30)

    n_rows = -(-n // sub)                       # logical rows of the packed view
    if n_rows <= _TR_MAX:
        tr = _round_up(max(n_rows, 1), _LANE)   # single block; cheap pad for small N
        n_rows_arr, grid1 = tr, 1
    else:
        tr = _TR_MAX
        grid1 = -(-n_rows // tr)
        n_rows_arr = n_rows                     # last input block may be partial (masked)
    n_rows_out = grid1 * tr

    nq = n_rows_arr * sub
    if nq != n:
        logits = jnp.pad(logits, ((0, nq - n), (0, 0)))
    r = logits.reshape(n_rows_arr, lane)        # free reshape when no padding was needed

    labq = jnp.pad(labels.astype(jnp.int32), (0, n_rows_out * sub - n),
                   constant_values=-1)
    lab8 = labq.reshape(n_rows_out, sub).T      # (sub, n_rows_out); tiny int32 transpose

    ca = pl.pallas_call(
        functools.partial(_conf_acc_kernel, sub=sub, c_pad=c_pad, n_valid=n),
        grid=(grid1,),
        in_specs=[pl.BlockSpec((tr, lane), lambda i: (i, 0)),
                  pl.BlockSpec((sub, tr), lambda i: (0, i))],
        out_specs=pl.BlockSpec((2 * sub, tr), lambda i: (0, i)),
        out_shape=jax.ShapeDtypeStruct((2 * sub, n_rows_out), jnp.float32),
        compiler_params=pltpu.CompilerParams(
            dimension_semantics=("parallel",),
            vmem_limit_bytes=_VMEM_LIMIT),
    )(r, lab8)

    # ---- equal-count bin edges (np.histogram / histedges_equalN semantics) ----
    # TODO(synk): O(N log N) sort stays in plain JAX.  Padded entries are exactly
    # 0.0 < min(conf), so the valid confidences are the last `n` sorted values.
    conf_sorted = jnp.sort(ca[:sub, :].reshape(-1))[sub * n_rows_out - n:]
    edges = jnp.interp(jnp.linspace(0.0, float(n), N_BINS + 1),
                       jnp.arange(n, dtype=jnp.float32),
                       conf_sorted).astype(jnp.float32).reshape(N_BINS + 1, 1)

    parts = pl.pallas_call(
        functools.partial(_bin_partial_kernel, sub=sub),
        grid=(grid1,),
        in_specs=[pl.BlockSpec((2 * sub, tr), lambda i: (0, i)),
                  pl.BlockSpec((N_BINS + 1, 1), lambda i: (0, 0))],
        out_specs=pl.BlockSpec((1, sub, N_BINS + 1, 3), lambda i: (i, 0, 0, 0)),
        out_shape=jax.ShapeDtypeStruct((grid1, sub, N_BINS + 1, 3), jnp.float32),
        compiler_params=pltpu.CompilerParams(
            dimension_semantics=("parallel",),
            vmem_limit_bytes=_VMEM_LIMIT),
    )(ca, edges)

    # ---- trivial O(n_bins) finalize; also merges the per-core/block partials --
    tot = parts.sum(axis=(0, 1))                       # (N_BINS+1, 3)
    cnt = tot[:-1, 0] - tot[1:, 0]                     # per-bin (e_k, e_{k+1}] counts
    csum = tot[:-1, 1] - tot[1:, 1]
    asum = tot[:-1, 2] - tot[1:, 2]
    prop = cnt / jnp.float32(n)
    safe = jnp.maximum(cnt, 1.0)
    ece = jnp.sum(jnp.where(cnt > 0,
                            jnp.abs(csum / safe - asum / safe) * prop, 0.0))
    return ece.reshape(1)                              # matches torch.zeros(1) output


# ------------------------------ reference -----------------------------------
def _reference(logits, labels, n_bins=N_BINS):
    logits = np.asarray(logits, dtype=np.float32)
    labels = np.asarray(labels)
    z = logits - logits.max(axis=1, keepdims=True)
    p = np.exp(z)
    p /= p.sum(axis=1, keepdims=True)
    conf = p.max(axis=1)
    pred = p.argmax(axis=1)
    acc = (pred == labels).astype(np.float32)
    npt = len(conf)
    edges = np.interp(np.linspace(0, npt, n_bins + 1), np.arange(npt), np.sort(conf))
    ece = 0.0
    for lo, hi in zip(edges[:-1], edges[1:]):
        in_bin = (conf > lo) & (conf <= hi)
        prop = in_bin.mean()
        if prop > 0:
            ece += abs(conf[in_bin].mean() - acc[in_bin].mean()) * prop
    return np.array([ece], dtype=np.float32)


if __name__ == "__main__":
    key = jax.random.PRNGKey(0)
    k1, k2 = jax.random.split(key)
    N, C = 256, 16
    logits = jax.random.normal(k1, (N, C), dtype=jnp.float32) * 3.0
    labels = jax.random.randint(k2, (N,), 0, C, dtype=jnp.int32)

    ece = adaptive_ece(logits, labels)
    jax.block_until_ready(ece)

    ref = _reference(np.asarray(logits), np.asarray(labels))
    np.testing.assert_allclose(np.asarray(ece), ref, atol=1e-2)

    print("KERNEL_OK")
</pallas_src>

<mosaic_0001>
module attributes {stable_mosaic.version = 11 : i64} {
  func.func @_conf_acc_kernel(%arg0: i32, %arg1: memref<128x128xf32, #tpu.memory_space<vmem>>, %arg2: memref<8x128xi32, #tpu.memory_space<vmem>>, %arg3: memref<16x128xf32, #tpu.memory_space<vmem>>) attributes {dimension_semantics = [#tpu.dimension_semantics<parallel>], iteration_bounds = array<i64: 1>, scalar_prefetch = 0 : i64, scratch_operands = 0 : i64, tpu.core_type = #tpu.core_type<tc>, window_params = [{transform_indices = @transform_0, window_bounds = array<i64: 128, 128>}, {transform_indices = @transform_1, window_bounds = array<i64: 8, 128>}, {transform_indices = @transform_2, window_bounds = array<i64: 16, 128>}]} {
    %c0 = arith.constant 0 : index
    %c0_0 = arith.constant 0 : index
    %0 = vector.load %arg1[%c0, %c0_0] : memref<128x128xf32, #tpu.memory_space<vmem>>, vector<128x128xf32>
    %1 = tpu.transpose %0, [1, 0] : vector<128x128xf32> -> vector<128x128xf32>
    %2 = tpu.iota {dimensions = array<i32: 1>} : vector<1x128xi32>
    %3 = tpu.iota {dimensions = array<i32: 0>} : vector<16x128xi32>
    %4 = vector.extract_strided_slice %1 {offsets = [0, 0], sizes = [16, 128], strides = [1, 1]} : vector<128x128xf32> to vector<16x128xf32>
    %cst = arith.constant dense<0xFF800000> : vector<128xf32>
    %5 = vector.multi_reduction <maximumf>, %4, %cst [0] : vector<16x128xf32> to vector<128xf32>
    %6 = vector.shape_cast %5 : vector<128xf32> to vector<1x128xf32>
    %7 = vector.broadcast %6 : vector<1x128xf32> to vector<16x128xf32>
    %8 = arith.subf %4, %7 : vector<16x128xf32>
    %9 = math.exp %8 : vector<16x128xf32>
    %cst_1 = arith.constant dense<0.000000e+00> : vector<128xf32>
    %10 = vector.multi_reduction <add>, %9, %cst_1 [0] : vector<16x128xf32> to vector<128xf32>
    %11 = vector.shape_cast %10 : vector<128xf32> to vector<1x128xf32>
    %12 = tpu.reciprocal %11 {approx = true} : vector<1x128xf32> -> vector<1x128xf32>
    %13 = vector.broadcast %6 : vector<1x128xf32> to vector<16x128xf32>
    %14 = arith.cmpf oge, %4, %13 : vector<16x128xf32>
    %c16_i32 = arith.constant 16 : i32
    %15 = vector.broadcast %c16_i32 : i32 to vector<16x128xi32>
    %16 = arith.select %14, %3, %15 : vector<16x128xi1>, vector<16x128xi32>
    %cst_2 = arith.constant dense<2147483647> : vector<128xi32>
    %17 = vector.multi_reduction <minsi>, %16, %cst_2 [0] : vector<16x128xi32> to vector<128xi32>
    %18 = vector.shape_cast %17 : vector<128xi32> to vector<1x128xi32>
    %c0_3 = arith.constant 0 : index
    %c0_4 = arith.constant 0 : index
    %19 = vector.load %arg2[%c0_3, %c0_4] : memref<8x128xi32, #tpu.memory_space<vmem>>, vector<1x128xi32>
    %20 = arith.cmpi eq, %18, %19 : vector<1x128xi32>
    %21 = arith.extui %20 : vector<1x128xi1> to vector<1x128xi32>
    %22 = arith.sitofp %21 : vector<1x128xi32> to vector<1x128xf32>
    %c128_i32 = arith.constant 128 : i32
    %23 = arith.muli %arg0, %c128_i32 : i32
    %24 = vector.broadcast %23 : i32 to vector<1x128xi32>
    %25 = arith.addi %24, %2 : vector<1x128xi32>
    %c8_i32 = arith.constant 8 : i32
    %26 = vector.broadcast %c8_i32 : i32 to vector<1x128xi32>
    %27 = arith.muli %26, %25 : vector<1x128xi32>
    %c0_i32 = arith.constant 0 : i32
    %28 = vector.broadcast %c0_i32 : i32 to vector<1x128xi32>
    %29 = arith.addi %27, %28 : vector<1x128xi32>
    %c256_i32 = arith.constant 256 : i32
    %30 = vector.broadcast %c256_i32 : i32 to vector<1x128xi32>
    %31 = arith.cmpi slt, %29, %30 : vector<1x128xi32>
    %cst_5 = arith.constant 0.000000e+00 : f32
    %32 = vector.broadcast %cst_5 : f32 to vector<1x128xf32>
    %33 = arith.select %31, %12, %32 : vector<1x128xi1>, vector<1x128xf32>
    %c0_6 = arith.constant 0 : index
    %c0_7 = arith.constant 0 : index
    %34 = vector.load %arg3[%c0_6, %c0_7] : memref<16x128xf32, #tpu.memory_space<vmem>>, vector<1x128xf32>
    tpu.vector_store %arg3[%c0_6, %c0_7], %33 {strides = array<i32>} : memref<16x128xf32, #tpu.memory_space<vmem>>, vector<1x128xf32>,
    %cst_8 = arith.constant 0.000000e+00 : f32
    %35 = vector.broadcast %cst_8 : f32 to vector<1x128xf32>
    %36 = arith.select %31, %22, %35 : vector<1x128xi1>, vector<1x128xf32>
    %c8 = arith.constant 8 : index
    %c0_9 = arith.constant 0 : index
    %37 = vector.load %arg3[%c8, %c0_9] : memref<16x128xf32, #tpu.memory_space<vmem>>, vector<1x128xf32>
    tpu.vector_store %arg3[%c8, %c0_9], %36 {strides = array<i32>} : memref<16x128xf32, #tpu.memory_space<vmem>>, vector<1x128xf32>,
    %38 = vector.extract_strided_slice %1 {offsets = [16, 0], sizes = [16, 128], strides = [1, 1]} : vector<128x128xf32> to vector<16x128xf32>
    %cst_10 = arith.constant dense<0xFF800000> : vector<128xf32>
    %39 = vector.multi_reduction <maximumf>, %38, %cst_10 [0] : vector<16x128xf32> to vector<128xf32>
    %40 = vector.shape_cast %39 : vector<128xf32> to vector<1x128xf32>
    %41 = vector.broadcast %40 : vector<1x128xf32> to vector<16x128xf32>
    %42 = arith.subf %38, %41 : vector<16x128xf32>
    %43 = math.exp %42 : vector<16x128xf32>
    %cst_11 = arith.constant dense<0.000000e+00> : vector<128xf32>
    %44 = vector.multi_reduction <add>, %43, %cst_11 [0] : vector<16x128xf32> to vector<128xf32>
    %45 = vector.shape_cast %44 : vector<128xf32> to vector<1x128xf32>
    %46 = tpu.reciprocal %45 {approx = true} : vector<1x128xf32> -> vector<1x128xf32>
    %47 = vector.broadcast %40 : vector<1x128xf32> to vector<16x128xf32>
    %48 = arith.cmpf oge, %38, %47 : vector<16x128xf32>
    %c16_i32_12 = arith.constant 16 : i32
    %49 = vector.broadcast %c16_i32_12 : i32 to vector<16x128xi32>
    %50 = arith.select %48, %3, %49 : vector<16x128xi1>, vector<16x128xi32>
    %cst_13 = arith.constant dense<2147483647> : vector<128xi32>
    %51 = vector.multi_reduction <minsi>, %50, %cst_13 [0] : vector<16x128xi32> to vector<128xi32>
    %52 = vector.shape_cast %51 : vector<128xi32> to vector<1x128xi32>
    %c1 = arith.constant 1 : index
    %c0_14 = arith.constant 0 : index
    %53 = vector.load %arg2[%c1, %c0_14] : memref<8x128xi32, #tpu.memory_space<vmem>>, vector<1x128xi32>
    %54 = arith.cmpi eq, %52, %53 : vector<1x128xi32>
    %55 = arith.extui %54 : vector<1x128xi1> to vector<1x128xi32>
    %56 = arith.sitofp %55 : vector<1x128xi32> to vector<1x128xf32>
    %c128_i32_15 = arith.constant 128 : i32
    %57 = arith.muli %arg0, %c128_i32_15 : i32
    %58 = vector.broadcast %57 : i32 to vector<1x128xi32>
    %59 = arith.addi %58, %2 : vector<1x128xi32>
    %c8_i32_16 = arith.constant 8 : i32
    %60 = vector.broadcast %c8_i32_16 : i32 to vector<1x128xi32>
    %61 = arith.muli %60, %59 : vector<1x128xi32>
    %c1_i32 = arith.constant 1 : i32
    %62 = vector.broadcast %c1_i32 : i32 to vector<1x128xi32>
    %63 = arith.addi %61, %62 : vector<1x128xi32>
    %c256_i32_17 = arith.constant 256 : i32
    %64 = vector.broadcast %c256_i32_17 : i32 to vector<1x128xi32>
    %65 = arith.cmpi slt, %63, %64 : vector<1x128xi32>
    %cst_18 = arith.constant 0.000000e+00 : f32
    %66 = vector.broadcast %cst_18 : f32 to vector<1x128xf32>
    %67 = arith.select %65, %46, %66 : vector<1x128xi1>, vector<1x128xf32>
    %c1_19 = arith.constant 1 : index
    %c0_20 = arith.constant 0 : index
    %68 = vector.load %arg3[%c1_19, %c0_20] : memref<16x128xf32, #tpu.memory_space<vmem>>, vector<1x128xf32>
    tpu.vector_store %arg3[%c1_19, %c0_20], %67 {strides = array<i32>} : memref<16x128xf32, #tpu.memory_space<vmem>>, vector<1x128xf32>,
    %cst_21 = arith.constant 0.000000e+00 : f32
    %69 = vector.broadcast %cst_21 : f32 to vector<1x128xf32>
    %70 = arith.select %65, %56, %69 : vector<1x128xi1>, vector<1x128xf32>
    %c9 = arith.constant 9 : index
    %c0_22 = arith.constant 0 : index
    %71 = vector.load %arg3[%c9, %c0_22] : memref<16x128xf32, #tpu.memory_space<vmem>>, vector<1x128xf32>
    tpu.vector_store %arg3[%c9, %c0_22], %70 {strides = array<i32>} : memref<16x128xf32, #tpu.memory_space<vmem>>, vector<1x128xf32>,
    %72 = vector.extract_strided_slice %1 {offsets = [32, 0], sizes = [16, 128], strides = [1, 1]} : vector<128x128xf32> to vector<16x128xf32>
    %cst_23 = arith.constant dense<0xFF800000> : vector<128xf32>
    %73 = vector.multi_reduction <maximumf>, %72, %cst_23 [0] : vector<16x128xf32> to vector<128xf32>
    %74 = vector.shape_cast %73 : vector<128xf32> to vector<1x128xf32>
    %75 = vector.broadcast %74 : vector<1x128xf32> to vector<16x128xf32>
    %76 = arith.subf %72, %75 : vector<16x128xf32>
    %77 = math.exp %76 : vector<16x128xf32>
    %cst_24 = arith.constant dense<0.000000e+00> : vector<128xf32>
    %78 = vector.multi_reduction <add>, %77, %cst_24 [0] : vector<16x128xf32> to vector<128xf32>
    %79 = vector.shape_cast %78 : vector<128xf32> to vector<1x128xf32>
    %80 = tpu.reciprocal %79 {approx = true} : vector<1x128xf32> -> vector<1x128xf32>
    %81 = vector.broadcast %74 : vector<1x128xf32> to vector<16x128xf32>
    %82 = arith.cmpf oge, %72, %81 : vector<16x128xf32>
    %c16_i32_25 = arith.constant 16 : i32
    %83 = vector.broadcast %c16_i32_25 : i32 to vector<16x128xi32>
    %84 = arith.select %82, %3, %83 : vector<16x128xi1>, vector<16x128xi32>
    %cst_26 = arith.constant dense<2147483647> : vector<128xi32>
    %85 = vector.multi_reduction <minsi>, %84, %cst_26 [0] : vector<16x128xi32> to vector<128xi32>
    %86 = vector.shape_cast %85 : vector<128xi32> to vector<1x128xi32>
    %c2 = arith.constant 2 : index
    %c0_27 = arith.constant 0 : index
    %87 = vector.load %arg2[%c2, %c0_27] : memref<8x128xi32, #tpu.memory_space<vmem>>, vector<1x128xi32>
    %88 = arith.cmpi eq, %86, %87 : vector<1x128xi32>
    %89 = arith.extui %88 : vector<1x128xi1> to vector<1x128xi32>
    %90 = arith.sitofp %89 : vector<1x128xi32> to vector<1x128xf32>
    %c128_i32_28 = arith.constant 128 : i32
    %91 = arith.muli %arg0, %c128_i32_28 : i32
    %92 = vector.broadcast %91 : i32 to vector<1x128xi32>
    %93 = arith.addi %92, %2 : vector<1x128xi32>
    %c8_i32_29 = arith.constant 8 : i32
    %94 = vector.broadcast %c8_i32_29 : i32 to vector<1x128xi32>
    %95 = arith.muli %94, %93 : vector<1x128xi32>
    %c2_i32 = arith.constant 2 : i32
    %96 = vector.broadcast %c2_i32 : i32 to vector<1x128xi32>
    %97 = arith.addi %95, %96 : vector<1x128xi32>
    %c256_i32_30 = arith.constant 256 : i32
    %98 = vector.broadcast %c256_i32_30 : i32 to vector<1x128xi32>
    %99 = arith.cmpi slt, %97, %98 : vector<1x128xi32>
    %cst_31 = arith.constant 0.000000e+00 : f32
    %100 = vector.broadcast %cst_31 : f32 to vector<1x128xf32>
    %101 = arith.select %99, %80, %100 : vector<1x128xi1>, vector<1x128xf32>
    %c2_32 = arith.constant 2 : index
    %c0_33 = arith.constant 0 : index
    %102 = vector.load %arg3[%c2_32, %c0_33] : memref<16x128xf32, #tpu.memory_space<vmem>>, vector<1x128xf32>
    tpu.vector_store %arg3[%c2_32, %c0_33], %101 {strides = array<i32>} : memref<16x128xf32, #tpu.memory_space<vmem>>, vector<1x128xf32>,
    %cst_34 = arith.constant 0.000000e+00 : f32
    %103 = vector.broadcast %cst_34 : f32 to vector<1x128xf32>
    %104 = arith.select %99, %90, %103 : vector<1x128xi1>, vector<1x128xf32>
    %c10 = arith.constant 10 : index
    %c0_35 = arith.constant 0 : index
    %105 = vector.load %arg3[%c10, %c0_35] : memref<16x128xf32, #tpu.memory_space<vmem>>, vector<1x128xf32>
    tpu.vector_store %arg3[%c10, %c0_35], %104 {strides = array<i32>} : memref<16x128xf32, #tpu.memory_space<vmem>>, vector<1x128xf32>,
    %106 = vector.extract_strided_slice %1 {offsets = [48, 0], sizes = [16, 128], strides = [1, 1]} : vector<128x128xf32> to vector<16x128xf32>
    %cst_36 = arith.constant dense<0xFF800000> : vector<128xf32>
    %107 = vector.multi_reduction <maximumf>, %106, %cst_36 [0] : vector<16x128xf32> to vector<128xf32>
    %108 = vector.shape_cast %107 : vector<128xf32> to vector<1x128xf32>
    %109 = vector.broadcast %108 : vector<1x128xf32> to vector<16x128xf32>
    %110 = arith.subf %106, %109 : vector<16x128xf32>
    %111 = math.exp %110 : vector<16x128xf32>
    %cst_37 = arith.constant dense<0.000000e+00> : vector<128xf32>
    %112 = vector.multi_reduction <add>, %111, %cst_37 [0] : vector<16x128xf32> to vector<128xf32>
    %113 = vector.shape_cast %112 : vector<128xf32> to vector<1x128xf32>
    %114 = tpu.reciprocal %113 {approx = true} : vector<1x128xf32> -> vector<1x128xf32>
    %115 = vector.broadcast %108 : vector<1x128xf32> to vector<16x128xf32>
    %116 = arith.cmpf oge, %106, %115 : vector<16x128xf32>
    %c16_i32_38 = arith.constant 16 : i32
    %117 = vector.broadcast %c16_i32_38 : i32 to vector<16x128xi32>
    %118 = arith.select %116, %3, %117 : vector<16x128xi1>, vector<16x128xi32>
    %cst_39 = arith.constant dense<2147483647> : vector<128xi32>
    %119 = vector.multi_reduction <minsi>, %118, %cst_39 [0] : vector<16x128xi32> to vector<128xi32>
    %120 = vector.shape_cast %119 : vector<128xi32> to vector<1x128xi32>
    %c3 = arith.constant 3 : index
    %c0_40 = arith.constant 0 : index
    %121 = vector.load %arg2[%c3, %c0_40] : memref<8x128xi32, #tpu.memory_space<vmem>>, vector<1x128xi32>
    %122 = arith.cmpi eq, %120, %121 : vector<1x128xi32>
    %123 = arith.extui %122 : vector<1x128xi1> to vector<1x128xi32>
    %124 = arith.sitofp %123 : vector<1x128xi32> to vector<1x128xf32>
    %c128_i32_41 = arith.constant 128 : i32
    %125 = arith.muli %arg0, %c128_i32_41 : i32
    %126 = vector.broadcast %125 : i32 to vector<1x128xi32>
    %127 = arith.addi %126, %2 : vector<1x128xi32>
    %c8_i32_42 = arith.constant 8 : i32
    %128 = vector.broadcast %c8_i32_42 : i32 to vector<1x128xi32>
    %129 = arith.muli %128, %127 : vector<1x128xi32>
    %c3_i32 = arith.constant 3 : i32
    %130 = vector.broadcast %c3_i32 : i32 to vector<1x128xi32>
    %131 = arith.addi %129, %130 : vector<1x128xi32>
    %c256_i32_43 = arith.constant 256 : i32
    %132 = vector.broadcast %c256_i32_43 : i32 to vector<1x128xi32>
    %133 = arith.cmpi slt, %131, %132 : vector<1x128xi32>
    %cst_44 = arith.constant 0.000000e+00 : f32
    %134 = vector.broadcast %cst_44 : f32 to vector<1x128xf32>
    %135 = arith.select %133, %114, %134 : vector<1x128xi1>, vector<1x128xf32>
    %c3_45 = arith.constant 3 : index
    %c0_46 = arith.constant 0 : index
    %136 = vector.load %arg3[%c3_45, %c0_46] : memref<16x128xf32, #tpu.memory_space<vmem>>, vector<1x128xf32>
    tpu.vector_store %arg3[%c3_45, %c0_46], %135 {strides = array<i32>} : memref<16x128xf32, #tpu.memory_space<vmem>>, vector<1x128xf32>,
    %cst_47 = arith.constant 0.000000e+00 : f32
    %137 = vector.broadcast %cst_47 : f32 to vector<1x128xf32>
    %138 = arith.select %133, %124, %137 : vector<1x128xi1>, vector<1x128xf32>
    %c11 = arith.constant 11 : index
    %c0_48 = arith.constant 0 : index
    %139 = vector.load %arg3[%c11, %c0_48] : memref<16x128xf32, #tpu.memory_space<vmem>>, vector<1x128xf32>
    tpu.vector_store %arg3[%c11, %c0_48], %138 {strides = array<i32>} : memref<16x128xf32, #tpu.memory_space<vmem>>, vector<1x128xf32>,
    %140 = vector.extract_strided_slice %1 {offsets = [64, 0], sizes = [16, 128], strides = [1, 1]} : vector<128x128xf32> to vector<16x128xf32>
    %cst_49 = arith.constant dense<0xFF800000> : vector<128xf32>
    %141 = vector.multi_reduction <maximumf>, %140, %cst_49 [0] : vector<16x128xf32> to vector<128xf32>
    %142 = vector.shape_cast %141 : vector<128xf32> to vector<1x128xf32>
    %143 = vector.broadcast %142 : vector<1x128xf32> to vector<16x128xf32>
    %144 = arith.subf %140, %143 : vector<16x128xf32>
    %145 = math.exp %144 : vector<16x128xf32>
    %cst_50 = arith.constant dense<0.000000e+00> : vector<128xf32>
    %146 = vector.multi_reduction <add>, %145, %cst_50 [0] : vector<16x128xf32> to vector<128xf32>
    %147 = vector.shape_cast %146 : vector<128xf32> to vector<1x128xf32>
    %148 = tpu.reciprocal %147 {approx = true} : vector<1x128xf32> -> vector<1x128xf32>
    %149 = vector.broadcast %142 : vector<1x128xf32> to vector<16x128xf32>
    %150 = arith.cmpf oge, %140, %149 : vector<16x128xf32>
    %c16_i32_51 = arith.constant 16 : i32
    %151 = vector.broadcast %c16_i32_51 : i32 to vector<16x128xi32>
    %152 = arith.select %150, %3, %151 : vector<16x128xi1>, vector<16x128xi32>
    %cst_52 = arith.constant dense<2147483647> : vector<128xi32>
    %153 = vector.multi_reduction <minsi>, %152, %cst_52 [0] : vector<16x128xi32> to vector<128xi32>
    %154 = vector.shape_cast %153 : vector<128xi32> to vector<1x128xi32>
    %c4 = arith.constant 4 : index
    %c0_53 = arith.constant 0 : index
    %155 = vector.load %arg2[%c4, %c0_53] : memref<8x128xi32, #tpu.memory_space<vmem>>, vector<1x128xi32>
    %156 = arith.cmpi eq, %154, %155 : vector<1x128xi32>
    %157 = arith.extui %156 : vector<1x128xi1> to vector<1x128xi32>
    %158 = arith.sitofp %157 : vector<1x128xi32> to vector<1x128xf32>
    %c128_i32_54 = arith.constant 128 : i32
    %159 = arith.muli %arg0, %c128_i32_54 : i32
    %160 = vector.broadcast %159 : i32 to vector<1x128xi32>
    %161 = arith.addi %160, %2 : vector<1x128xi32>
    %c8_i32_55 = arith.constant 8 : i32
    %162 = vector.broadcast %c8_i32_55 : i32 to vector<1x128xi32>
    %163 = arith.muli %162, %161 : vector<1x128xi32>
    %c4_i32 = arith.constant 4 : i32
    %164 = vector.broadcast %c4_i32 : i32 to vector<1x128xi32>
    %165 = arith.addi %163, %164 : vector<1x128xi32>
    %c256_i32_56 = arith.constant 256 : i32
    %166 = vector.broadcast %c256_i32_56 : i32 to vector<1x128xi32>
    %167 = arith.cmpi slt, %165, %166 : vector<1x128xi32>
    %cst_57 = arith.constant 0.000000e+00 : f32
    %168 = vector.broadcast %cst_57 : f32 to vector<1x128xf32>
    %169 = arith.select %167, %148, %168 : vector<1x128xi1>, vector<1x128xf32>
    %c4_58 = arith.constant 4 : index
    %c0_59 = arith.constant 0 : index
    %170 = vector.load %arg3[%c4_58, %c0_59] : memref<16x128xf32, #tpu.memory_space<vmem>>, vector<1x128xf32>
    tpu.vector_store %arg3[%c4_58, %c0_59], %169 {strides = array<i32>} : memref<16x128xf32, #tpu.memory_space<vmem>>, vector<1x128xf32>,
    %cst_60 = arith.constant 0.000000e+00 : f32
    %171 = vector.broadcast %cst_60 : f32 to vector<1x128xf32>
    %172 = arith.select %167, %158, %171 : vector<1x128xi1>, vector<1x128xf32>
    %c12 = arith.constant 12 : index
    %c0_61 = arith.constant 0 : index
    %173 = vector.load %arg3[%c12, %c0_61] : memref<16x128xf32, #tpu.memory_space<vmem>>, vector<1x128xf32>
    tpu.vector_store %arg3[%c12, %c0_61], %172 {strides = array<i32>} : memref<16x128xf32, #tpu.memory_space<vmem>>, vector<1x128xf32>,
    %174 = vector.extract_strided_slice %1 {offsets = [80, 0], sizes = [16, 128], strides = [1, 1]} : vector<128x128xf32> to vector<16x128xf32>
    %cst_62 = arith.constant dense<0xFF800000> : vector<128xf32>
    %175 = vector.multi_reduction <maximumf>, %174, %cst_62 [0] : vector<16x128xf32> to vector<128xf32>
    %176 = vector.shape_cast %175 : vector<128xf32> to vector<1x128xf32>
    %177 = vector.broadcast %176 : vector<1x128xf32> to vector<16x128xf32>
    %178 = arith.subf %174, %177 : vector<16x128xf32>
    %179 = math.exp %178 : vector<16x128xf32>
    %cst_63 = arith.constant dense<0.000000e+00> : vector<128xf32>
    %180 = vector.multi_reduction <add>, %179, %cst_63 [0] : vector<16x128xf32> to vector<128xf32>
    %181 = vector.shape_cast %180 : vector<128xf32> to vector<1x128xf32>
    %182 = tpu.reciprocal %181 {approx = true} : vector<1x128xf32> -> vector<1x128xf32>
    %183 = vector.broadcast %176 : vector<1x128xf32> to vector<16x128xf32>
    %184 = arith.cmpf oge, %174, %183 : vector<16x128xf32>
    %c16_i32_64 = arith.constant 16 : i32
    %185 = vector.broadcast %c16_i32_64 : i32 to vector<16x128xi32>
    %186 = arith.select %184, %3, %185 : vector<16x128xi1>, vector<16x128xi32>
    %cst_65 = arith.constant dense<2147483647> : vector<128xi32>
    %187 = vector.multi_reduction <minsi>, %186, %cst_65 [0] : vector<16x128xi32> to vector<128xi32>
    %188 = vector.shape_cast %187 : vector<128xi32> to vector<1x128xi32>
    %c5 = arith.constant 5 : index
    %c0_66 = arith.constant 0 : index
    %189 = vector.load %arg2[%c5, %c0_66] : memref<8x128xi32, #tpu.memory_space<vmem>>, vector<1x128xi32>
    %190 = arith.cmpi eq, %188, %189 : vector<1x128xi32>
    %191 = arith.extui %190 : vector<1x128xi1> to vector<1x128xi32>
    %192 = arith.sitofp %191 : vector<1x128xi32> to vector<1x128xf32>
    %c128_i32_67 = arith.constant 128 : i32
    %193 = arith.muli %arg0, %c128_i32_67 : i32
    %194 = vector.broadcast %193 : i32 to vector<1x128xi32>
    %195 = arith.addi %194, %2 : vector<1x128xi32>
    %c8_i32_68 = arith.constant 8 : i32
    %196 = vector.broadcast %c8_i32_68 : i32 to vector<1x128xi32>
    %197 = arith.muli %196, %195 : vector<1x128xi32>
    %c5_i32 = arith.constant 5 : i32
    %198 = vector.broadcast %c5_i32 : i32 to vector<1x128xi32>
    %199 = arith.addi %197, %198 : vector<1x128xi32>
    %c256_i32_69 = arith.constant 256 : i32
    %200 = vector.broadcast %c256_i32_69 : i32 to vector<1x128xi32>
    %201 = arith.cmpi slt, %199, %200 : vector<1x128xi32>
    %cst_70 = arith.constant 0.000000e+00 : f32
    %202 = vector.broadcast %cst_70 : f32 to vector<1x128xf32>
    %203 = arith.select %201, %182, %202 : vector<1x128xi1>, vector<1x128xf32>
    %c5_71 = arith.constant 5 : index
    %c0_72 = arith.constant 0 : index
    %204 = vector.load %arg3[%c5_71, %c0_72] : memref<16x128xf32, #tpu.memory_space<vmem>>, vector<1x128xf32>
    tpu.vector_store %arg3[%c5_71, %c0_72], %203 {strides = array<i32>} : memref<16x128xf32, #tpu.memory_space<vmem>>, vector<1x128xf32>,
    %cst_73 = arith.constant 0.000000e+00 : f32
    %205 = vector.broadcast %cst_73 : f32 to vector<1x128xf32>
    %206 = arith.select %201, %192, %205 : vector<1x128xi1>, vector<1x128xf32>
    %c13 = arith.constant 13 : index
    %c0_74 = arith.constant 0 : index
    %207 = vector.load %arg3[%c13, %c0_74] : memref<16x128xf32, #tpu.memory_space<vmem>>, vector<1x128xf32>
    tpu.vector_store %arg3[%c13, %c0_74], %206 {strides = array<i32>} : memref<16x128xf32, #tpu.memory_space<vmem>>, vector<1x128xf32>,
    %208 = vector.extract_strided_slice %1 {offsets = [96, 0], sizes = [16, 128], strides = [1, 1]} : vector<128x128xf32> to vector<16x128xf32>
    %cst_75 = arith.constant dense<0xFF800000> : vector<128xf32>
    %209 = vector.multi_reduction <maximumf>, %208, %cst_75 [0] : vector<16x128xf32> to vector<128xf32>
    %210 = vector.shape_cast %209 : vector<128xf32> to vector<1x128xf32>
    %211 = vector.broadcast %210 : vector<1x128xf32> to vector<16x128xf32>
    %212 = arith.subf %208, %211 : vector<16x128xf32>
    %213 = math.exp %212 : vector<16x128xf32>
    %cst_76 = arith.constant dense<0.000000e+00> : vector<128xf32>
    %214 = vector.multi_reduction <add>, %213, %cst_76 [0] : vector<16x128xf32> to vector<128xf32>
    %215 = vector.shape_cast %214 : vector<128xf32> to vector<1x128xf32>
    %216 = tpu.reciprocal %215 {approx = true} : vector<1x128xf32> -> vector<1x128xf32>
    %217 = vector.broadcast %210 : vector<1x128xf32> to vector<16x128xf32>
    %218 = arith.cmpf oge, %208, %217 : vector<16x128xf32>
    %c16_i32_77 = arith.constant 16 : i32
    %219 = vector.broadcast %c16_i32_77 : i32 to vector<16x128xi32>
    %220 = arith.select %218, %3, %219 : vector<16x128xi1>, vector<16x128xi32>
    %cst_78 = arith.constant dense<2147483647> : vector<128xi32>
    %221 = vector.multi_reduction <minsi>, %220, %cst_78 [0] : vector<16x128xi32> to vector<128xi32>
    %222 = vector.shape_cast %221 : vector<128xi32> to vector<1x128xi32>
    %c6 = arith.constant 6 : index
    %c0_79 = arith.constant 0 : index
    %223 = vector.load %arg2[%c6, %c0_79] : memref<8x128xi32, #tpu.memory_space<vmem>>, vector<1x128xi32>
    %224 = arith.cmpi eq, %222, %223 : vector<1x128xi32>
    %225 = arith.extui %224 : vector<1x128xi1> to vector<1x128xi32>
    %226 = arith.sitofp %225 : vector<1x128xi32> to vector<1x128xf32>
    %c128_i32_80 = arith.constant 128 : i32
    %227 = arith.muli %arg0, %c128_i32_80 : i32
    %228 = vector.broadcast %227 : i32 to vector<1x128xi32>
    %229 = arith.addi %228, %2 : vector<1x128xi32>
    %c8_i32_81 = arith.constant 8 : i32
    %230 = vector.broadcast %c8_i32_81 : i32 to vector<1x128xi32>
    %231 = arith.muli %230, %229 : vector<1x128xi32>
    %c6_i32 = arith.constant 6 : i32
    %232 = vector.broadcast %c6_i32 : i32 to vector<1x128xi32>
    %233 = arith.addi %231, %232 : vector<1x128xi32>
    %c256_i32_82 = arith.constant 256 : i32
    %234 = vector.broadcast %c256_i32_82 : i32 to vector<1x128xi32>
    %235 = arith.cmpi slt, %233, %234 : vector<1x128xi32>
    %cst_83 = arith.constant 0.000000e+00 : f32
    %236 = vector.broadcast %cst_83 : f32 to vector<1x128xf32>
    %237 = arith.select %235, %216, %236 : vector<1x128xi1>, vector<1x128xf32>
    %c6_84 = arith.constant 6 : index
    %c0_85 = arith.constant 0 : index
    %238 = vector.load %arg3[%c6_84, %c0_85] : memref<16x128xf32, #tpu.memory_space<vmem>>, vector<1x128xf32>
    tpu.vector_store %arg3[%c6_84, %c0_85], %237 {strides = array<i32>} : memref<16x128xf32, #tpu.memory_space<vmem>>, vector<1x128xf32>,
    %cst_86 = arith.constant 0.000000e+00 : f32
    %239 = vector.broadcast %cst_86 : f32 to vector<1x128xf32>
    %240 = arith.select %235, %226, %239 : vector<1x128xi1>, vector<1x128xf32>
    %c14 = arith.constant 14 : index
    %c0_87 = arith.constant 0 : index
    %241 = vector.load %arg3[%c14, %c0_87] : memref<16x128xf32, #tpu.memory_space<vmem>>, vector<1x128xf32>
    tpu.vector_store %arg3[%c14, %c0_87], %240 {strides = array<i32>} : memref<16x128xf32, #tpu.memory_space<vmem>>, vector<1x128xf32>,
    %242 = vector.extract_strided_slice %1 {offsets = [112, 0], sizes = [16, 128], strides = [1, 1]} : vector<128x128xf32> to vector<16x128xf32>
    %cst_88 = arith.constant dense<0xFF800000> : vector<128xf32>
    %243 = vector.multi_reduction <maximumf>, %242, %cst_88 [0] : vector<16x128xf32> to vector<128xf32>
    %244 = vector.shape_cast %243 : vector<128xf32> to vector<1x128xf32>
    %245 = vector.broadcast %244 : vector<1x128xf32> to vector<16x128xf32>
    %246 = arith.subf %242, %245 : vector<16x128xf32>
    %247 = math.exp %246 : vector<16x128xf32>
    %cst_89 = arith.constant dense<0.000000e+00> : vector<128xf32>
    %248 = vector.multi_reduction <add>, %247, %cst_89 [0] : vector<16x128xf32> to vector<128xf32>
    %249 = vector.shape_cast %248 : vector<128xf32> to vector<1x128xf32>
    %250 = tpu.reciprocal %249 {approx = true} : vector<1x128xf32> -> vector<1x128xf32>
    %251 = vector.broadcast %244 : vector<1x128xf32> to vector<16x128xf32>
    %252 = arith.cmpf oge, %242, %251 : vector<16x128xf32>
    %c16_i32_90 = arith.constant 16 : i32
    %253 = vector.broadcast %c16_i32_90 : i32 to vector<16x128xi32>
    %254 = arith.select %252, %3, %253 : vector<16x128xi1>, vector<16x128xi32>
    %cst_91 = arith.constant dense<2147483647> : vector<128xi32>
    %255 = vector.multi_reduction <minsi>, %254, %cst_91 [0] : vector<16x128xi32> to vector<128xi32>
    %256 = vector.shape_cast %255 : vector<128xi32> to vector<1x128xi32>
    %c7 = arith.constant 7 : index
    %c0_92 = arith.constant 0 : index
    %257 = vector.load %arg2[%c7, %c0_92] : memref<8x128xi32, #tpu.memory_space<vmem>>, vector<1x128xi32>
    %258 = arith.cmpi eq, %256, %257 : vector<1x128xi32>
    %259 = arith.extui %258 : vector<1x128xi1> to vector<1x128xi32>
    %260 = arith.sitofp %259 : vector<1x128xi32> to vector<1x128xf32>
    %c128_i32_93 = arith.constant 128 : i32
    %261 = arith.muli %arg0, %c128_i32_93 : i32
    %262 = vector.broadcast %261 : i32 to vector<1x128xi32>
    %263 = arith.addi %262, %2 : vector<1x128xi32>
    %c8_i32_94 = arith.constant 8 : i32
    %264 = vector.broadcast %c8_i32_94 : i32 to vector<1x128xi32>
    %265 = arith.muli %264, %263 : vector<1x128xi32>
    %c7_i32 = arith.constant 7 : i32
    %266 = vector.broadcast %c7_i32 : i32 to vector<1x128xi32>
    %267 = arith.addi %265, %266 : vector<1x128xi32>
    %c256_i32_95 = arith.constant 256 : i32
    %268 = vector.broadcast %c256_i32_95 : i32 to vector<1x128xi32>
    %269 = arith.cmpi slt, %267, %268 : vector<1x128xi32>
    %cst_96 = arith.constant 0.000000e+00 : f32
    %270 = vector.broadcast %cst_96 : f32 to vector<1x128xf32>
    %271 = arith.select %269, %250, %270 : vector<1x128xi1>, vector<1x128xf32>
    %c7_97 = arith.constant 7 : index
    %c0_98 = arith.constant 0 : index
    %272 = vector.load %arg3[%c7_97, %c0_98] : memref<16x128xf32, #tpu.memory_space<vmem>>, vector<1x128xf32>
    tpu.vector_store %arg3[%c7_97, %c0_98], %271 {strides = array<i32>} : memref<16x128xf32, #tpu.memory_space<vmem>>, vector<1x128xf32>,
    %cst_99 = arith.constant 0.000000e+00 : f32
    %273 = vector.broadcast %cst_99 : f32 to vector<1x128xf32>
    %274 = arith.select %269, %260, %273 : vector<1x128xi1>, vector<1x128xf32>
    %c15 = arith.constant 15 : index
    %c0_100 = arith.constant 0 : index
    %275 = vector.load %arg3[%c15, %c0_100] : memref<16x128xf32, #tpu.memory_space<vmem>>, vector<1x128xf32>
    tpu.vector_store %arg3[%c15, %c0_100], %274 {strides = array<i32>} : memref<16x128xf32, #tpu.memory_space<vmem>>, vector<1x128xf32>,
    return
  }
  func.func @transform_0(%arg0: i32) -> (i32, i32) {
    %c0_i32 = arith.constant 0 : i32
    %c0_i32_0 = arith.constant 0 : i32
    return %arg0, %c0_i32 : i32, i32
  }
  func.func @transform_1(%arg0: i32) -> (i32, i32) {
    %c0_i32 = arith.constant 0 : i32
    %c0_i32_0 = arith.constant 0 : i32
    return %c0_i32, %arg0 : i32, i32
  }
  func.func @transform_2(%arg0: i32) -> (i32, i32) {
    %c0_i32 = arith.constant 0 : i32
    %c0_i32_0 = arith.constant 0 : i32
    return %c0_i32, %arg0 : i32, i32
  }
}

module attributes {stable_mosaic.version = 11 : i64} {
  func.func @_bin_partial_kernel(%arg0: i32, %arg1: memref<16x128xf32, #tpu.memory_space<vmem>>, %arg2: memref<16x1xf32, #tpu.memory_space<vmem>>, %arg3: memref<1x8x16x3xf32, #tpu.memory_space<vmem>>) attributes {dimension_semantics = [#tpu.dimension_semantics<parallel>], iteration_bounds = array<i64: 1>, scalar_prefetch = 0 : i64, scratch_operands = 0 : i64, tpu.core_type = #tpu.core_type<tc>, window_params = [{transform_indices = @transform_0, window_bounds = array<i64: 16, 128>}, {pipeline_mode = #tpu.pipeline_mode<synchronous>, transform_indices = @transform_1, window_bounds = array<i64: 16, 1>}, {transform_indices = @transform_2, window_bounds = array<i64: 1, 8, 16, 3>}]} {
    %c0 = arith.constant 0 : index
    %c0_0 = arith.constant 0 : index
    %0 = vector.load %arg2[%c0, %c0_0] : memref<16x1xf32, #tpu.memory_space<vmem>>, vector<16x1xf32>
    %1 = tpu.iota {dimensions = array<i32: 0>} : vector<3x128xi32>
    %c0_1 = arith.constant 0 : index
    %c0_2 = arith.constant 0 : index
    %2 = vector.load %arg1[%c0_1, %c0_2] : memref<16x128xf32, #tpu.memory_space<vmem>>, vector<1x128xf32>
    %c8 = arith.constant 8 : index
    %c0_3 = arith.constant 0 : index
    %3 = vector.load %arg1[%c8, %c0_3] : memref<16x128xf32, #tpu.memory_space<vmem>>, vector<1x128xf32>
    %4 = vector.broadcast %2 : vector<1x128xf32> to vector<16x128xf32>
    %5 = vector.broadcast %0 : vector<16x1xf32> to vector<16x128xf32>
    %6 = arith.cmpf ogt, %4, %5 : vector<16x128xf32>
    %7 = arith.extui %6 : vector<16x128xi1> to vector<16x128xi32>
    %8 = arith.sitofp %7 : vector<16x128xi32> to vector<16x128xf32>
    %c0_i32 = arith.constant 0 : i32
    %9 = vector.broadcast %c0_i32 : i32 to vector<3x128xi32>
    %10 = arith.cmpi eq, %1, %9 : vector<3x128xi32>
    %c1_i32 = arith.constant 1 : i32
    %11 = vector.broadcast %c1_i32 : i32 to vector<3x128xi32>
    %12 = arith.cmpi eq, %1, %11 : vector<3x128xi32>
    %13 = vector.shape_cast %2 : vector<1x128xf32> to vector<1x128xf32>
    %14 = vector.broadcast %13 : vector<1x128xf32> to vector<3x128xf32>
    %15 = vector.shape_cast %3 : vector<1x128xf32> to vector<1x128xf32>
    %16 = vector.broadcast %15 : vector<1x128xf32> to vector<3x128xf32>
    %17 = arith.select %12, %14, %16 : vector<3x128xi1>, vector<3x128xf32>
    %cst = arith.constant 1.000000e+00 : f32
    %18 = vector.broadcast %cst : f32 to vector<3x128xf32>
    %19 = arith.select %10, %18, %17 : vector<3x128xi1>, vector<3x128xf32>
    %cst_4 = arith.constant dense<0.000000e+00> : vector<16x3xf32>
    %20 = tpu.matmul %8, %19, %cst_4 {dimension_numbers = #tpu.dot_dimension_numbers<[1], [1], [0], [0], [0, 0, 1, 0], [], []>} : vector<16x128xf32>, vector<3x128xf32>, vector<16x3xf32> -> vector<16x3xf32>
    %c0_5 = arith.constant 0 : index
    %c0_6 = arith.constant 0 : index
    %c0_7 = arith.constant 0 : index
    %c0_8 = arith.constant 0 : index
    %21 = vector.load %arg3[%c0_5, %c0_6, %c0_7, %c0_8] : memref<1x8x16x3xf32, #tpu.memory_space<vmem>>, vector<1x1x16x3xf32>
    %22 = vector.shape_cast %21 : vector<1x1x16x3xf32> to vector<16x3xf32>
    %23 = vector.shape_cast %20 : vector<16x3xf32> to vector<1x1x16x3xf32>
    tpu.vector_store %arg3[%c0_5, %c0_6, %c0_7, %c0_8], %23 {strides = array<i32>} : memref<1x8x16x3xf32, #tpu.memory_space<vmem>>, vector<1x1x16x3xf32>,
    %c1 = arith.constant 1 : index
    %c0_9 = arith.constant 0 : index
    %24 = vector.load %arg1[%c1, %c0_9] : memref<16x128xf32, #tpu.memory_space<vmem>>, vector<1x128xf32>
    %c9 = arith.constant 9 : index
    %c0_10 = arith.constant 0 : index
    %25 = vector.load %arg1[%c9, %c0_10] : memref<16x128xf32, #tpu.memory_space<vmem>>, vector<1x128xf32>
    %26 = vector.broadcast %24 : vector<1x128xf32> to vector<16x128xf32>
    %27 = vector.broadcast %0 : vector<16x1xf32> to vector<16x128xf32>
    %28 = arith.cmpf ogt, %26, %27 : vector<16x128xf32>
    %29 = arith.extui %28 : vector<16x128xi1> to vector<16x128xi32>
    %30 = arith.sitofp %29 : vector<16x128xi32> to vector<16x128xf32>
    %c0_i32_11 = arith.constant 0 : i32
    %31 = vector.broadcast %c0_i32_11 : i32 to vector<3x128xi32>
    %32 = arith.cmpi eq, %1, %31 : vector<3x128xi32>
    %c1_i32_12 = arith.constant 1 : i32
    %33 = vector.broadcast %c1_i32_12 : i32 to vector<3x128xi32>
    %34 = arith.cmpi eq, %1, %33 : vector<3x128xi32>
    %35 = vector.shape_cast %24 : vector<1x128xf32> to vector<1x128xf32>
    %36 = vector.broadcast %35 : vector<1x128xf32> to vector<3x128xf32>
    %37 = vector.shape_cast %25 : vector<1x128xf32> to vector<1x128xf32>
    %38 = vector.broadcast %37 : vector<1x128xf32> to vector<3x128xf32>
    %39 = arith.select %34, %36, %38 : vector<3x128xi1>, vector<3x128xf32>
    %cst_13 = arith.constant 1.000000e+00 : f32
    %40 = vector.broadcast %cst_13 : f32 to vector<3x128xf32>
    %41 = arith.select %32, %40, %39 : vector<3x128xi1>, vector<3x128xf32>
    %cst_14 = arith.constant dense<0.000000e+00> : vector<16x3xf32>
    %42 = tpu.matmul %30, %41, %cst_14 {dimension_numbers = #tpu.dot_dimension_numbers<[1], [1], [0], [0], [0, 0, 1, 0], [], []>} : vector<16x128xf32>, vector<3x128xf32>, vector<16x3xf32> -> vector<16x3xf32>
    %c0_15 = arith.constant 0 : index
    %c1_16 = arith.constant 1 : index
    %c0_17 = arith.constant 0 : index
    %c0_18 = arith.constant 0 : index
    %43 = vector.load %arg3[%c0_15, %c1_16, %c0_17, %c0_18] : memref<1x8x16x3xf32, #tpu.memory_space<vmem>>, vector<1x1x16x3xf32>
    %44 = vector.shape_cast %43 : vector<1x1x16x3xf32> to vector<16x3xf32>
    %45 = vector.shape_cast %42 : vector<16x3xf32> to vector<1x1x16x3xf32>
    tpu.vector_store %arg3[%c0_15, %c1_16, %c0_17, %c0_18], %45 {strides = array<i32>} : memref<1x8x16x3xf32, #tpu.memory_space<vmem>>, vector<1x1x16x3xf32>,
    %c2 = arith.constant 2 : index
    %c0_19 = arith.constant 0 : index
    %46 = vector.load %arg1[%c2, %c0_19] : memref<16x128xf32, #tpu.memory_space<vmem>>, vector<1x128xf32>
    %c10 = arith.constant 10 : index
    %c0_20 = arith.constant 0 : index
    %47 = vector.load %arg1[%c10, %c0_20] : memref<16x128xf32, #tpu.memory_space<vmem>>, vector<1x128xf32>
    %48 = vector.broadcast %46 : vector<1x128xf32> to vector<16x128xf32>
    %49 = vector.broadcast %0 : vector<16x1xf32> to vector<16x128xf32>
    %50 = arith.cmpf ogt, %48, %49 : vector<16x128xf32>
    %51 = arith.extui %50 : vector<16x128xi1> to vector<16x128xi32>
    %52 = arith.sitofp %51 : vector<16x128xi32> to vector<16x128xf32>
    %c0_i32_21 = arith.constant 0 : i32
    %53 = vector.broadcast %c0_i32_21 : i32 to vector<3x128xi32>
    %54 = arith.cmpi eq, %1, %53 : vector<3x128xi32>
    %c1_i32_22 = arith.constant 1 : i32
    %55 = vector.broadcast %c1_i32_22 : i32 to vector<3x128xi32>
    %56 = arith.cmpi eq, %1, %55 : vector<3x128xi32>
    %57 = vector.shape_cast %46 : vector<1x128xf32> to vector<1x128xf32>
    %58 = vector.broadcast %57 : vector<1x128xf32> to vector<3x128xf32>
    %59 = vector.shape_cast %47 : vector<1x128xf32> to vector<1x128xf32>
    %60 = vector.broadcast %59 : vector<1x128xf32> to vector<3x128xf32>
    %61 = arith.select %56, %58, %60 : vector<3x128xi1>, vector<3x128xf32>
    %cst_23 = arith.constant 1.000000e+00 : f32
    %62 = vector.broadcast %cst_23 : f32 to vector<3x128xf32>
    %63 = arith.select %54, %62, %61 : vector<3x128xi1>, vector<3x128xf32>
    %cst_24 = arith.constant dense<0.000000e+00> : vector<16x3xf32>
    %64 = tpu.matmul %52, %63, %cst_24 {dimension_numbers = #tpu.dot_dimension_numbers<[1], [1], [0], [0], [0, 0, 1, 0], [], []>} : vector<16x128xf32>, vector<3x128xf32>, vector<16x3xf32> -> vector<16x3xf32>
    %c0_25 = arith.constant 0 : index
    %c2_26 = arith.constant 2 : index
    %c0_27 = arith.constant 0 : index
    %c0_28 = arith.constant 0 : index
    %65 = vector.load %arg3[%c0_25, %c2_26, %c0_27, %c0_28] : memref<1x8x16x3xf32, #tpu.memory_space<vmem>>, vector<1x1x16x3xf32>
    %66 = vector.shape_cast %65 : vector<1x1x16x3xf32> to vector<16x3xf32>
    %67 = vector.shape_cast %64 : vector<16x3xf32> to vector<1x1x16x3xf32>
    tpu.vector_store %arg3[%c0_25, %c2_26, %c0_27, %c0_28], %67 {strides = array<i32>} : memref<1x8x16x3xf32, #tpu.memory_space<vmem>>, vector<1x1x16x3xf32>,
    %c3 = arith.constant 3 : index
    %c0_29 = arith.constant 0 : index
    %68 = vector.load %arg1[%c3, %c0_29] : memref<16x128xf32, #tpu.memory_space<vmem>>, vector<1x128xf32>
    %c11 = arith.constant 11 : index
    %c0_30 = arith.constant 0 : index
    %69 = vector.load %arg1[%c11, %c0_30] : memref<16x128xf32, #tpu.memory_space<vmem>>, vector<1x128xf32>
    %70 = vector.broadcast %68 : vector<1x128xf32> to vector<16x128xf32>
    %71 = vector.broadcast %0 : vector<16x1xf32> to vector<16x128xf32>
    %72 = arith.cmpf ogt, %70, %71 : vector<16x128xf32>
    %73 = arith.extui %72 : vector<16x128xi1> to vector<16x128xi32>
    %74 = arith.sitofp %73 : vector<16x128xi32> to vector<16x128xf32>
    %c0_i32_31 = arith.constant 0 : i32
    %75 = vector.broadcast %c0_i32_31 : i32 to vector<3x128xi32>
    %76 = arith.cmpi eq, %1, %75 : vector<3x128xi32>
    %c1_i32_32 = arith.constant 1 : i32
    %77 = vector.broadcast %c1_i32_32 : i32 to vector<3x128xi32>
    %78 = arith.cmpi eq, %1, %77 : vector<3x128xi32>
    %79 = vector.shape_cast %68 : vector<1x128xf32> to vector<1x128xf32>
    %80 = vector.broadcast %79 : vector<1x128xf32> to vector<3x128xf32>
    %81 = vector.shape_cast %69 : vector<1x128xf32> to vector<1x128xf32>
    %82 = vector.broadcast %81 : vector<1x128xf32> to vector<3x128xf32>
    %83 = arith.select %78, %80, %82 : vector<3x128xi1>, vector<3x128xf32>
    %cst_33 = arith.constant 1.000000e+00 : f32
    %84 = vector.broadcast %cst_33 : f32 to vector<3x128xf32>
    %85 = arith.select %76, %84, %83 : vector<3x128xi1>, vector<3x128xf32>
    %cst_34 = arith.constant dense<0.000000e+00> : vector<16x3xf32>
    %86 = tpu.matmul %74, %85, %cst_34 {dimension_numbers = #tpu.dot_dimension_numbers<[1], [1], [0], [0], [0, 0, 1, 0], [], []>} : vector<16x128xf32>, vector<3x128xf32>, vector<16x3xf32> -> vector<16x3xf32>
    %c0_35 = arith.constant 0 : index
    %c3_36 = arith.constant 3 : index
    %c0_37 = arith.constant 0 : index
    %c0_38 = arith.constant 0 : index
    %87 = vector.load %arg3[%c0_35, %c3_36, %c0_37, %c0_38] : memref<1x8x16x3xf32, #tpu.memory_space<vmem>>, vector<1x1x16x3xf32>
    %88 = vector.shape_cast %87 : vector<1x1x16x3xf32> to vector<16x3xf32>
    %89 = vector.shape_cast %86 : vector<16x3xf32> to vector<1x1x16x3xf32>
    tpu.vector_store %arg3[%c0_35, %c3_36, %c0_37, %c0_38], %89 {strides = array<i32>} : memref<1x8x16x3xf32, #tpu.memory_space<vmem>>, vector<1x1x16x3xf32>,
    %c4 = arith.constant 4 : index
    %c0_39 = arith.constant 0 : index
    %90 = vector.load %arg1[%c4, %c0_39] : memref<16x128xf32, #tpu.memory_space<vmem>>, vector<1x128xf32>
    %c12 = arith.constant 12 : index
    %c0_40 = arith.constant 0 : index
    %91 = vector.load %arg1[%c12, %c0_40] : memref<16x128xf32, #tpu.memory_space<vmem>>, vector<1x128xf32>
    %92 = vector.broadcast %90 : vector<1x128xf32> to vector<16x128xf32>
    %93 = vector.broadcast %0 : vector<16x1xf32> to vector<16x128xf32>
    %94 = arith.cmpf ogt, %92, %93 : vector<16x128xf32>
    %95 = arith.extui %94 : vector<16x128xi1> to vector<16x128xi32>
    %96 = arith.sitofp %95 : vector<16x128xi32> to vector<16x128xf32>
    %c0_i32_41 = arith.constant 0 : i32
    %97 = vector.broadcast %c0_i32_41 : i32 to vector<3x128xi32>
    %98 = arith.cmpi eq, %1, %97 : vector<3x128xi32>
    %c1_i32_42 = arith.constant 1 : i32
    %99 = vector.broadcast %c1_i32_42 : i32 to vector<3x128xi32>
    %100 = arith.cmpi eq, %1, %99 : vector<3x128xi32>
    %101 = vector.shape_cast %90 : vector<1x128xf32> to vector<1x128xf32>
    %102 = vector.broadcast %101 : vector<1x128xf32> to vector<3x128xf32>
    %103 = vector.shape_cast %91 : vector<1x128xf32> to vector<1x128xf32>
    %104 = vector.broadcast %103 : vector<1x128xf32> to vector<3x128xf32>
    %105 = arith.select %100, %102, %104 : vector<3x128xi1>, vector<3x128xf32>
    %cst_43 = arith.constant 1.000000e+00 : f32
    %106 = vector.broadcast %cst_43 : f32 to vector<3x128xf32>
    %107 = arith.select %98, %106, %105 : vector<3x128xi1>, vector<3x128xf32>
    %cst_44 = arith.constant dense<0.000000e+00> : vector<16x3xf32>
    %108 = tpu.matmul %96, %107, %cst_44 {dimension_numbers = #tpu.dot_dimension_numbers<[1], [1], [0], [0], [0, 0, 1, 0], [], []>} : vector<16x128xf32>, vector<3x128xf32>, vector<16x3xf32> -> vector<16x3xf32>
    %c0_45 = arith.constant 0 : index
    %c4_46 = arith.constant 4 : index
    %c0_47 = arith.constant 0 : index
    %c0_48 = arith.constant 0 : index
    %109 = vector.load %arg3[%c0_45, %c4_46, %c0_47, %c0_48] : memref<1x8x16x3xf32, #tpu.memory_space<vmem>>, vector<1x1x16x3xf32>
    %110 = vector.shape_cast %109 : vector<1x1x16x3xf32> to vector<16x3xf32>
    %111 = vector.shape_cast %108 : vector<16x3xf32> to vector<1x1x16x3xf32>
    tpu.vector_store %arg3[%c0_45, %c4_46, %c0_47, %c0_48], %111 {strides = array<i32>} : memref<1x8x16x3xf32, #tpu.memory_space<vmem>>, vector<1x1x16x3xf32>,
    %c5 = arith.constant 5 : index
    %c0_49 = arith.constant 0 : index
    %112 = vector.load %arg1[%c5, %c0_49] : memref<16x128xf32, #tpu.memory_space<vmem>>, vector<1x128xf32>
    %c13 = arith.constant 13 : index
    %c0_50 = arith.constant 0 : index
    %113 = vector.load %arg1[%c13, %c0_50] : memref<16x128xf32, #tpu.memory_space<vmem>>, vector<1x128xf32>
    %114 = vector.broadcast %112 : vector<1x128xf32> to vector<16x128xf32>
    %115 = vector.broadcast %0 : vector<16x1xf32> to vector<16x128xf32>
    %116 = arith.cmpf ogt, %114, %115 : vector<16x128xf32>
    %117 = arith.extui %116 : vector<16x128xi1> to vector<16x128xi32>
    %118 = arith.sitofp %117 : vector<16x128xi32> to vector<16x128xf32>
    %c0_i32_51 = arith.constant 0 : i32
    %119 = vector.broadcast %c0_i32_51 : i32 to vector<3x128xi32>
    %120 = arith.cmpi eq, %1, %119 : vector<3x128xi32>
    %c1_i32_52 = arith.constant 1 : i32
    %121 = vector.broadcast %c1_i32_52 : i32 to vector<3x128xi32>
    %122 = arith.cmpi eq, %1, %121 : vector<3x128xi32>
    %123 = vector.shape_cast %112 : vector<1x128xf32> to vector<1x128xf32>
    %124 = vector.broadcast %123 : vector<1x128xf32> to vector<3x128xf32>
    %125 = vector.shape_cast %113 : vector<1x128xf32> to vector<1x128xf32>
    %126 = vector.broadcast %125 : vector<1x128xf32> to vector<3x128xf32>
    %127 = arith.select %122, %124, %126 : vector<3x128xi1>, vector<3x128xf32>
    %cst_53 = arith.constant 1.000000e+00 : f32
    %128 = vector.broadcast %cst_53 : f32 to vector<3x128xf32>
    %129 = arith.select %120, %128, %127 : vector<3x128xi1>, vector<3x128xf32>
    %cst_54 = arith.constant dense<0.000000e+00> : vector<16x3xf32>
    %130 = tpu.matmul %118, %129, %cst_54 {dimension_numbers = #tpu.dot_dimension_numbers<[1], [1], [0], [0], [0, 0, 1, 0], [], []>} : vector<16x128xf32>, vector<3x128xf32>, vector<16x3xf32> -> vector<16x3xf32>
    %c0_55 = arith.constant 0 : index
    %c5_56 = arith.constant 5 : index
    %c0_57 = arith.constant 0 : index
    %c0_58 = arith.constant 0 : index
    %131 = vector.load %arg3[%c0_55, %c5_56, %c0_57, %c0_58] : memref<1x8x16x3xf32, #tpu.memory_space<vmem>>, vector<1x1x16x3xf32>
    %132 = vector.shape_cast %131 : vector<1x1x16x3xf32> to vector<16x3xf32>
    %133 = vector.shape_cast %130 : vector<16x3xf32> to vector<1x1x16x3xf32>
    tpu.vector_store %arg3[%c0_55, %c5_56, %c0_57, %c0_58], %133 {strides = array<i32>} : memref<1x8x16x3xf32, #tpu.memory_space<vmem>>, vector<1x1x16x3xf32>,
    %c6 = arith.constant 6 : index
    %c0_59 = arith.constant 0 : index
    %134 = vector.load %arg1[%c6, %c0_59] : memref<16x128xf32, #tpu.memory_space<vmem>>, vector<1x128xf32>
    %c14 = arith.constant 14 : index
    %c0_60 = arith.constant 0 : index
    %135 = vector.load %arg1[%c14, %c0_60] : memref<16x128xf32, #tpu.memory_space<vmem>>, vector<1x128xf32>
    %136 = vector.broadcast %134 : vector<1x128xf32> to vector<16x128xf32>
    %137 = vector.broadcast %0 : vector<16x1xf32> to vector<16x128xf32>
    %138 = arith.cmpf ogt, %136, %137 : vector<16x128xf32>
    %139 = arith.extui %138 : vector<16x128xi1> to vector<16x128xi32>
    %140 = arith.sitofp %139 : vector<16x128xi32> to vector<16x128xf32>
    %c0_i32_61 = arith.constant 0 : i32
    %141 = vector.broadcast %c0_i32_61 : i32 to vector<3x128xi32>
    %142 = arith.cmpi eq, %1, %141 : vector<3x128xi32>
    %c1_i32_62 = arith.constant 1 : i32
    %143 = vector.broadcast %c1_i32_62 : i32 to vector<3x128xi32>
    %144 = arith.cmpi eq, %1, %143 : vector<3x128xi32>
    %145 = vector.shape_cast %134 : vector<1x128xf32> to vector<1x128xf32>
    %146 = vector.broadcast %145 : vector<1x128xf32> to vector<3x128xf32>
    %147 = vector.shape_cast %135 : vector<1x128xf32> to vector<1x128xf32>
    %148 = vector.broadcast %147 : vector<1x128xf32> to vector<3x128xf32>
    %149 = arith.select %144, %146, %148 : vector<3x128xi1>, vector<3x128xf32>
    %cst_63 = arith.constant 1.000000e+00 : f32
    %150 = vector.broadcast %cst_63 : f32 to vector<3x128xf32>
    %151 = arith.select %142, %150, %149 : vector<3x128xi1>, vector<3x128xf32>
    %cst_64 = arith.constant dense<0.000000e+00> : vector<16x3xf32>
    %152 = tpu.matmul %140, %151, %cst_64 {dimension_numbers = #tpu.dot_dimension_numbers<[1], [1], [0], [0], [0, 0, 1, 0], [], []>} : vector<16x128xf32>, vector<3x128xf32>, vector<16x3xf32> -> vector<16x3xf32>
    %c0_65 = arith.constant 0 : index
    %c6_66 = arith.constant 6 : index
    %c0_67 = arith.constant 0 : index
    %c0_68 = arith.constant 0 : index
    %153 = vector.load %arg3[%c0_65, %c6_66, %c0_67, %c0_68] : memref<1x8x16x3xf32, #tpu.memory_space<vmem>>, vector<1x1x16x3xf32>
    %154 = vector.shape_cast %153 : vector<1x1x16x3xf32> to vector<16x3xf32>
    %155 = vector.shape_cast %152 : vector<16x3xf32> to vector<1x1x16x3xf32>
    tpu.vector_store %arg3[%c0_65, %c6_66, %c0_67, %c0_68], %155 {strides = array<i32>} : memref<1x8x16x3xf32, #tpu.memory_space<vmem>>, vector<1x1x16x3xf32>,
    %c7 = arith.constant 7 : index
    %c0_69 = arith.constant 0 : index
    %156 = vector.load %arg1[%c7, %c0_69] : memref<16x128xf32, #tpu.memory_space<vmem>>, vector<1x128xf32>
    %c15 = arith.constant 15 : index
    %c0_70 = arith.constant 0 : index
    %157 = vector.load %arg1[%c15, %c0_70] : memref<16x128xf32, #tpu.memory_space<vmem>>, vector<1x128xf32>
    %158 = vector.broadcast %156 : vector<1x128xf32> to vector<16x128xf32>
    %159 = vector.broadcast %0 : vector<16x1xf32> to vector<16x128xf32>
    %160 = arith.cmpf ogt, %158, %159 : vector<16x128xf32>
    %161 = arith.extui %160 : vector<16x128xi1> to vector<16x128xi32>
    %162 = arith.sitofp %161 : vector<16x128xi32> to vector<16x128xf32>
    %c0_i32_71 = arith.constant 0 : i32
    %163 = vector.broadcast %c0_i32_71 : i32 to vector<3x128xi32>
    %164 = arith.cmpi eq, %1, %163 : vector<3x128xi32>
    %c1_i32_72 = arith.constant 1 : i32
    %165 = vector.broadcast %c1_i32_72 : i32 to vector<3x128xi32>
    %166 = arith.cmpi eq, %1, %165 : vector<3x128xi32>
    %167 = vector.shape_cast %156 : vector<1x128xf32> to vector<1x128xf32>
    %168 = vector.broadcast %167 : vector<1x128xf32> to vector<3x128xf32>
    %169 = vector.shape_cast %157 : vector<1x128xf32> to vector<1x128xf32>
    %170 = vector.broadcast %169 : vector<1x128xf32> to vector<3x128xf32>
    %171 = arith.select %166, %168, %170 : vector<3x128xi1>, vector<3x128xf32>
    %cst_73 = arith.constant 1.000000e+00 : f32
    %172 = vector.broadcast %cst_73 : f32 to vector<3x128xf32>
    %173 = arith.select %164, %172, %171 : vector<3x128xi1>, vector<3x128xf32>
    %cst_74 = arith.constant dense<0.000000e+00> : vector<16x3xf32>
    %174 = tpu.matmul %162, %173, %cst_74 {dimension_numbers = #tpu.dot_dimension_numbers<[1], [1], [0], [0], [0, 0, 1, 0], [], []>} : vector<16x128xf32>, vector<3x128xf32>, vector<16x3xf32> -> vector<16x3xf32>
    %c0_75 = arith.constant 0 : index
    %c7_76 = arith.constant 7 : index
    %c0_77 = arith.constant 0 : index
    %c0_78 = arith.constant 0 : index
    %175 = vector.load %arg3[%c0_75, %c7_76, %c0_77, %c0_78] : memref<1x8x16x3xf32, #tpu.memory_space<vmem>>, vector<1x1x16x3xf32>
    %176 = vector.shape_cast %175 : vector<1x1x16x3xf32> to vector<16x3xf32>
    %177 = vector.shape_cast %174 : vector<16x3xf32> to vector<1x1x16x3xf32>
    tpu.vector_store %arg3[%c0_75, %c7_76, %c0_77, %c0_78], %177 {strides = array<i32>} : memref<1x8x16x3xf32, #tpu.memory_space<vmem>>, vector<1x1x16x3xf32>,
    return
  }
  func.func @transform_0(%arg0: i32) -> (i32, i32) {
    %c0_i32 = arith.constant 0 : i32
    %c0_i32_0 = arith.constant 0 : i32
    return %c0_i32, %arg0 : i32, i32
  }
  func.func @transform_1(%arg0: i32) -> (i32, i32) {
    %c0_i32 = arith.constant 0 : i32
    %c0_i32_0 = arith.constant 0 : i32
    %c0_i32_1 = arith.constant 0 : i32
    return %c0_i32, %c0_i32_0 : i32, i32
  }
  func.func @transform_2(%arg0: i32) -> (i32, i32, i32, i32) {
    %c0_i32 = arith.constant 0 : i32
    %c0_i32_0 = arith.constant 0 : i32
    %c0_i32_1 = arith.constant 0 : i32
    %c0_i32_2 = arith.constant 0 : i32
    return %arg0, %c0_i32, %c0_i32_0, %c0_i32_1 : i32, i32, i32, i32
  }
}

</mosaic_0001>

<bundles_post_ra>
// kernel: custom-call
= control target key start
LH: loop header
LB: loop body
LE: loop exit
PB: predicated region body
PF: predicated region fallthrough
CT: control target
= control target key end

     0   :  { %s6_s0 = inlined_call_operand.vmem [shape: u32[16], index: 0, kind: output, shape index: {}]  }

// kernel: adaptive_ece.2
= control target key start
LH: loop header
LB: loop body
LE: loop exit
PB: predicated region body
PF: predicated region fallthrough
CT: control target
= control target key end

     0   :  { %v59_v20 = vlaneseq  ;;  %s779_s0 = inlined_call_operand.vmem [shape: f32[128,128], index: 0, kind: input, shape index: {}]   ;;  %s780_s1 = inlined_call_operand.vmem [shape: s32[8,128], index: 1, kind: input, shape index: {}]   ;;  %s781_s2 = inlined_call_operand.vmem [shape: f32[16,128], index: 2, kind: output, shape index: {}]  }
   0x1   :  { %v11_v0 = vld [vmem:[%s779_s0] sm:$0xff]  ;;  %v12_v1 = vld [vmem:[%s779_s0 + $0x8] sm:$0xff]  ;;  %v13_v2 = vld [vmem:[%s779_s0 + $0x10] sm:$0xff] }
   0x2   :  { %27 = vxpose.xlu0.b32.start [1/16] %v11_v0, 128  ;;  %v14_v3 = vld [vmem:[%s779_s0 + $0x18] sm:$0xff]  ;;  %v15_v4 = vld [vmem:[%s779_s0 + $0x20] sm:$0xff]  ;;  %v16_v5 = vld [vmem:[%s779_s0 + $0x28] sm:$0xff]  ;;  %v560_v24 = vshrl.u32 %v59_v20, 7  ;;  %v60_v45 = vand.u32 127, %v59_v20 }
   0x3   :  { %v17_v6 = vld [vmem:[%s779_s0 + $0x30] sm:$0xff]  ;;  %v18_v7 = vld [vmem:[%s779_s0 + $0x38] sm:$0xff]  ;;  %v19_v8 = vld [vmem:[%s779_s0 + $0x40] sm:$0xff] }
   0x4   :  { %v20_v9 = vld [vmem:[%s779_s0 + $0x48] sm:$0xff]  ;;  %v21_v10 = vld [vmem:[%s779_s0 + $0x50] sm:$0xff]  ;;  %v22_v11 = vld [vmem:[%s779_s0 + $0x58] sm:$0xff]  ;;  %v563_v30 = vadd.s32 8, %v560_v24  ;;  %v575_v54 = vmul.u32 8, %v60_v45 }
   0x5   :  { %v23_v12 = vld [vmem:[%s779_s0 + $0x60] sm:$0xff]  ;;  %v24_v13 = vld [vmem:[%s779_s0 + $0x68] sm:$0xff]  ;;  %v25_v14 = vld [vmem:[%s779_s0 + $0x70] sm:$0xff] }
   0x6   :  { %28 = vxpose.xlu0.b32.cont [2/16] %v12_v1, 128  ;;  %v26_v15 = vld [vmem:[%s779_s0 + $0x78] sm:$0xff]  ;;  %vm108_vm9 = vcmp.lt.s32.totalorder %v575_v54, 256 }
   0xa   :  { %29 = vxpose.xlu0.b32.cont [3/16] %v13_v2, 128 }
   0xe   :  { %30 = vxpose.xlu0.b32.cont [4/16] %v14_v3, 128 }
  0x12   :  { %31 = vxpose.xlu0.b32.cont [5/16] %v15_v4, 128 }
  0x16   :  { %32 = vxpose.xlu0.b32.cont [6/16] %v16_v5, 128  ;;  %v100_v5 = vld [vmem:[%s780_s1] sm:$0x1] }
  0x1a   :  { %33 = vxpose.xlu0.b32.cont [7/16] %v17_v6, 128 }
  0x1e   :  { %34 = vxpose.xlu0.b32.cont [8/16] %v18_v7, 128 }
  0x22   :  { %35 = vxpose.xlu0.b32.cont [9/16] %v19_v8, 128 }
  0x26   :  { %36 = vxpose.xlu0.b32.cont [10/16] %v20_v9, 128 }
  0x2a   :  { %37 = vxpose.xlu0.b32.cont [11/16] %v21_v10, 128  ;;  %v590_v10 = vadd.s32 1, %v575_v54 }
  0x2e   :  { %38 = vxpose.xlu0.b32.cont [12/16] %v22_v11, 128 }
  0x32   :  { %39 = vxpose.xlu0.b32.cont [13/16] %v23_v12, 128 }
  0x36   :  { %40 = vxpose.xlu0.b32.cont [14/16] %v24_v13, 128 }
  0x3a   :  { %41 = vxpose.xlu0.b32.cont [15/16] %v25_v14, 128 }
  0x3e   :  { %42 = vxpose.xlu0.b32.end [16/16] %v26_v15, 128 }
  0x7e   :  { %v43_v16 = vpop.trf.xlu0 }
  0x82   :  { %v44_v17 = vpop.trf.xlu0 }
  0x83   :  { %v64_v18 = vmax.f32 %v43_v16, %v44_v17 }
  0x85   :  { %v65_v19 = vrot.slane %v64_v18, 4 }
  0x86   :  { %v45_v21 = vpop.trf.xlu0 }
  0x87   :  { %v66_v22 = vmax.f32 %v64_v18, %v65_v19 }
  0x89   :  { %v67_v23 = vrot.slane %v66_v22, 2 }
  0x8a   :  { %v46_v25 = vpop.trf.xlu0 }
  0x8b   :  { %v68_v26 = vmax.f32 %v66_v22, %v67_v23  ;;  %v113_v27 = vmax.f32 %v45_v21, %v46_v25 }
  0x8d   :  { %v69_v28 = vrot.slane %v68_v26, 1  ;;  %v114_v29 = vrot.slane %v113_v27, 4 }
  0x8e   :  { %v565_v31 = vpop.trf.xlu0 }
  0x8f   :  { %v70_v32 = vmax.f32 %v68_v26, %v69_v28  ;;  %v115_v33 = vmax.f32 %v113_v27, %v114_v29 }
  0x91   :  { %v71_v34 = vsub.f32 %v43_v16, %v70_v32  ;;  %v72_v35 = vsub.f32 %v44_v17, %v70_v32  ;;  %vm85_vm0 = vcmp.ge.f32.partialorder %v43_v16, %v70_v32  ;;  %vm86_vm1 = vcmp.ge.f32.partialorder %v44_v17, %v70_v32 }
  0x92   :  { %v87_v36 = vsel %vm85_vm0, %v560_v24, 16  ;;  %v88_v37 = vsel %vm86_vm1, %v563_v30, 16  ;;  %v116_v38 = vrot.slane %v115_v33, 2  ;;  %v569_v39 = vpop.trf.xlu0  ;;  %v496_v16 = vmov 0.0  }
  0x93   :  { %v73_v40 = vmul.f32 1.442695, %v71_v34  ;;  %v75_v41 = vmul.f32 1.442695, %v72_v35  ;;  %vm89_vm2 = vcmp.lt.s32.totalorder %v87_v36, %v88_v37  ;;  %v159_v42 = vmax.f32 %v565_v31, %v569_v39 }
  0x94   :  { %v90_v43 = vsel %vm89_vm2, %v87_v36, %v88_v37  ;;  %v117_v44 = vmax.f32 %v115_v33, %v116_v38  ;;  %v149_v36 = vld [vmem:[%s780_s1 + $0x1] sm:$0x1]  ;;  %vm154_vm1 = vcmp.lt.s32.totalorder %v590_v10, 256 }
  0x95   :  { %448 = vpow2.f32 %v73_v40  ;;  %v91_v46 = vrot.slane %v90_v43, 4  ;;  %v160_v47 = vrot.slane %v159_v42, 4 }
  0x96   :  { %450 = vpow2.f32 %v75_v41  ;;  %v118_v48 = vrot.slane %v117_v44, 1  ;;  %v573_v49 = vpop.trf.xlu0 }
  0x97   :  { %vm92_vm3 = vcmp.lt.s32.totalorder %v90_v43, %v91_v46  ;;  %v161_v50 = vmax.f32 %v159_v42, %v160_v47 }
  0x98   :  { %v93_v51 = vsel %vm92_vm3, %v90_v43, %v91_v46  ;;  %v119_v52 = vmax.f32 %v117_v44, %v118_v48  ;;  %v615_v46 = vadd.s32 2, %v575_v54 }
  0x99   :  { %v94_v53 = vrot.slane %v93_v51, 2  ;;  %v162_v55 = vrot.slane %v161_v50, 2 }
  0x9a   :  { %v120_v56 = vsub.f32 %v45_v21, %v119_v52  ;;  %v121_v57 = vsub.f32 %v46_v25, %v119_v52  ;;  %vm134_vm4 = vcmp.ge.f32.partialorder %v45_v21, %v119_v52  ;;  %vm135_vm5 = vcmp.ge.f32.partialorder %v46_v25, %v119_v52  ;;  %v577_v58 = vpop.trf.xlu0 }
  0x9b   :  { %vm95_vm6 = vcmp.lt.s32.totalorder %v93_v51, %v94_v53  ;;  %v136_v59 = vsel %vm134_vm4, %v560_v24, 16  ;;  %v137_v60 = vsel %vm135_vm5, %v563_v30, 16  ;;  %v163_v61 = vmax.f32 %v161_v50, %v162_v55 }
  0x9c   :  { %v96_v62 = vsel %vm95_vm6, %v93_v51, %v94_v53  ;;  %v122_v63 = vmul.f32 1.442695, %v120_v56  ;;  %v124_v0 = vmul.f32 1.442695, %v121_v57  ;;  %vm138_vm7 = vcmp.lt.s32.totalorder %v136_v59, %v137_v60 }
  0x9d   :  { %v97_v1 = vrot.slane %v96_v62, 1  ;;  %v139_v2 = vsel %vm138_vm7, %v136_v59, %v137_v60  ;;  %v164_v3 = vrot.slane %v163_v61, 1  ;;  %v205_v4 = vmax.f32 %v573_v49, %v577_v58 }
  0x9e   :  { %452 = vpow2.f32 %v122_v63  ;;  %v140_v6 = vrot.slane %v139_v2, 4  ;;  %v586_v7 = vpop.trf.xlu0  ;;  %vm200_vm5 = vcmp.lt.s32.totalorder %v615_v46, 256 }
  0x9f   :  { %vm98_vm8 = vcmp.lt.s32.totalorder %v96_v62, %v97_v1  ;;  %454 = vpow2.f32 %v124_v0  ;;  %v165_v8 = vmax.f32 %v163_v61, %v164_v3  ;;  %v206_v11 = vrot.slane %v205_v4, 4 }
  0xa0   :  { %v99_v9 = vsel %vm98_vm8, %v96_v62, %v97_v1  ;;  %vm141_vm10 = vcmp.lt.s32.totalorder %v139_v2, %v140_v6 }
  0xa1   :  { %vm101_vm11 = vcmp.eq.s32.totalorder %v99_v9, %v100_v5  ;;  %v142_v12 = vsel %vm141_vm10, %v139_v2, %v140_v6  ;;  %v166_v13 = vsub.f32 %v565_v31, %v165_v8  ;;  %v167_v14 = vsub.f32 %v569_v39, %v165_v8  ;;  %v195_v9 = vld [vmem:[%s780_s1 + $0x2] sm:$0x1] }
  0xa2   :  { %v449_v15 = vpop.eup %448  ;;  %v439_v17 = vsel %vm101_vm11, 1.0, %v496_v16  ;;  %v143_v18 = vrot.slane %v142_v12, 2  ;;  %vm180_vm12 = vcmp.ge.f32.partialorder %v565_v31, %v165_v8  ;;  %vm181_vm13 = vcmp.ge.f32.partialorder %v569_v39, %v165_v8  ;;  %v597_v19 = vpop.trf.xlu0 }
  0xa3   :  { %v451_v20 = vpop.eup %450  ;;  %v111_v21 = vsel %vm108_vm9, %v439_v17, 0.0  ;;  %v168_v22 = vmul.f32 1.442695, %v166_v13  ;;  %v170_v23 = vmul.f32 1.442695, %v167_v14  ;;  %v182_v25 = vsel %vm180_vm12, %v560_v24, 16 }
  0xa4   :  { %v77_v26 = vadd.f32 %v451_v20, %v449_v15  ;;  %112 = vst [vmem:[%s781_s2 + $0x8] sm:$0x1] %v111_v21  ;;  %vm144_vm14 = vcmp.lt.s32.totalorder %v142_v12, %v143_v18  ;;  %v183_v27 = vsel %vm181_vm13, %v563_v30, 16  ;;  %v207_v28 = vmax.f32 %v205_v4, %v206_v11 }
  0xa5   :  { %v145_v29 = vsel %vm144_vm14, %v142_v12, %v143_v18  ;;  %456 = vpow2.f32 %v168_v22  ;;  %vm184_vm15 = vcmp.lt.s32.totalorder %v182_v25, %v183_v27  ;;  %v251_v31 = vmax.f32 %v586_v7, %v597_v19 }
  0xa6   :  { %v78_v32 = vrot.slane %v77_v26, 4  ;;  %v146_v33 = vrot.slane %v145_v29, 1  ;;  %458 = vpow2.f32 %v170_v23  ;;  %v185_v34 = vsel %vm184_vm15, %v182_v25, %v183_v27  ;;  %v608_v35 = vpop.trf.xlu0 }
  0xa7   :  { %v186_v37 = vrot.slane %v185_v34, 4  ;;  %v208_v38 = vrot.slane %v207_v28, 2  ;;  %v252_v39 = vrot.slane %v251_v31, 4 }
  0xa8   :  { %v79_v40 = vadd.f32 %v78_v32, %v77_v26  ;;  %vm147_vm0 = vcmp.lt.s32.totalorder %v145_v29, %v146_v33  ;;  %v648_v32 = vadd.s32 3, %v575_v54 }
  0xa9   :  { %v148_v41 = vsel %vm147_vm0, %v145_v29, %v146_v33  ;;  %vm187_vm2 = vcmp.lt.s32.totalorder %v185_v34, %v186_v37  ;;  %v209_v42 = vmax.f32 %v207_v28, %v208_v38  ;;  %v253_v43 = vmax.f32 %v251_v31, %v252_v39 }
  0xaa   :  { %v80_v44 = vrot.slane %v79_v40, 2  ;;  %vm150_vm3 = vcmp.eq.s32.totalorder %v148_v41, %v149_v36  ;;  %v188_v45 = vsel %vm187_vm2, %v185_v34, %v186_v37  ;;  %v617_v47 = vpop.trf.xlu0  ;;  %vm246_vm2 = vcmp.lt.s32.totalorder %v648_v32, 256 }
  0xab   :  { %v453_v48 = vpop.eup %452  ;;  %v440_v50 = vsel %vm150_vm3, 1.0, %v496_v16  ;;  %v189_v51 = vrot.slane %v188_v45, 2  ;;  %v210_v52 = vrot.slane %v209_v42, 1  ;;  %v254_v53 = vrot.slane %v253_v43, 2 }
  0xac   :  { %v455_v55 = vpop.eup %454  ;;  %v81_v56 = vadd.f32 %v80_v44, %v79_v40  ;;  %v157_v57 = vsel %vm154_vm1, %v440_v50, 0.0  ;;  %v297_v59 = vmax.f32 %v608_v35, %v617_v47 }
  0xad   :  { %v126_v60 = vadd.f32 %v455_v55, %v453_v48  ;;  %158 = vst [vmem:[%s781_s2 + $0x9] sm:$0x1] %v157_v57  ;;  %vm190_vm4 = vcmp.lt.s32.totalorder %v188_v45, %v189_v51  ;;  %v211_v61 = vmax.f32 %v209_v42, %v210_v52  ;;  %v255_v62 = vmax.f32 %v253_v43, %v254_v53 }
  0xae   :  { %v82_v63 = vrot.slane %v81_v56, 1  ;;  %v191_v0 = vsel %vm190_vm4, %v188_v45, %v189_v51  ;;  %v298_v1 = vrot.slane %v297_v59, 4  ;;  %v628_v2 = vpop.trf.xlu0 }
  0xaf   :  { %v127_v3 = vrot.slane %v126_v60, 4  ;;  %v192_v4 = vrot.slane %v191_v0, 1  ;;  %v212_v5 = vsub.f32 %v573_v49, %v211_v61  ;;  %v213_v6 = vsub.f32 %v577_v58, %v211_v61 }
  0xb0   :  { %v83_v8 = vadd.f32 %v82_v63, %v81_v56  ;;  %vm226_vm6 = vcmp.ge.f32.partialorder %v573_v49, %v211_v61  ;;  %vm227_vm7 = vcmp.ge.f32.partialorder %v577_v58, %v211_v61  ;;  %v256_v11 = vrot.slane %v255_v62, 1 }
  0xb1   :  { %v128_v12 = vadd.f32 %v127_v3, %v126_v60  ;;  %vm193_vm8 = vcmp.lt.s32.totalorder %v191_v0, %v192_v4  ;;  %v214_v13 = vmul.f32 1.442695, %v212_v5  ;;  %v216_v14 = vmul.f32 1.442695, %v213_v6 }
  0xb2   :  { %v457_v15 = vpop.eup %456  ;;  %460 = vrcp.f32 %v83_v8  ;;  %v194_v17 = vsel %vm193_vm8, %v191_v0, %v192_v4  ;;  %v228_v18 = vsel %vm226_vm6, %v560_v24, 16  ;;  %v229_v20 = vsel %vm227_vm7, %v563_v30, 16  ;;  %v639_v21 = vpop.trf.xlu0 }
  0xb3   :  { %v459_v22 = vpop.eup %458  ;;  %v129_v23 = vrot.slane %v128_v12, 2  ;;  %vm196_vm10 = vcmp.eq.s32.totalorder %v194_v17, %v195_v9  ;;  %462 = vpow2.f32 %v214_v13  ;;  %vm230_vm11 = vcmp.lt.s32.totalorder %v228_v18, %v229_v20 }
  0xb4   :  { %v172_v49 = vadd.f32 %v459_v22, %v457_v15  ;;  %v441_v58 = vsel %vm196_vm10, 1.0, %v496_v16  ;;  %464 = vpow2.f32 %v216_v14  ;;  %v231_v25 = vsel %vm230_vm11, %v228_v18, %v229_v20 }
  0xb5   :  { %v130_v26 = vadd.f32 %v129_v23, %v128_v12  ;;  %v203_v27 = vsel %vm200_vm5, %v441_v58, 0.0  ;;  %v232_v28 = vrot.slane %v231_v25, 4  ;;  %v257_v29 = vmax.f32 %v255_v62, %v256_v11  ;;  %v241_v62 = vld [vmem:[%s780_s1 + $0x3] sm:$0x1] }
  0xb6   :  { %v173_v31 = vrot.slane %v172_v49, 4  ;;  %204 = vst [vmem:[%s781_s2 + $0xa] sm:$0x1] %v203_v27  ;;  %v299_v33 = vmax.f32 %v297_v59, %v298_v1  ;;  %v343_v34 = vmax.f32 %v628_v2, %v639_v21  ;;  %v652_v36 = vpop.trf.xlu0  ;;  %v669_v3 = vadd.s32 4, %v575_v54 }
  0xb7   :  { %v131_v37 = vrot.slane %v130_v26, 1  ;;  %vm233_vm12 = vcmp.lt.s32.totalorder %v231_v25, %v232_v28  ;;  %v258_v38 = vsub.f32 %v586_v7, %v257_v29  ;;  %v259_v39 = vsub.f32 %v597_v19, %v257_v29 }
  0xb8   :  { %v174_v40 = vadd.f32 %v173_v31, %v172_v49  ;;  %v234_v41 = vsel %vm233_vm12, %v231_v25, %v232_v28  ;;  %vm272_vm13 = vcmp.ge.f32.partialorder %v586_v7, %v257_v29  ;;  %vm273_vm14 = vcmp.ge.f32.partialorder %v597_v19, %v257_v29 }
  0xb9   :  { %v132_v42 = vadd.f32 %v131_v37, %v130_v26  ;;  %v235_v43 = vrot.slane %v234_v41, 2  ;;  %v260_v44 = vmul.f32 1.442695, %v258_v38  ;;  %v262_v45 = vmul.f32 1.442695, %v259_v39 }
  0xba   :  { %v175_v48 = vrot.slane %v174_v40, 2  ;;  %v274_v50 = vsel %vm272_vm13, %v560_v24, 16  ;;  %v275_v51 = vsel %vm273_vm14, %v563_v30, 16  ;;  %v300_v52 = vrot.slane %v299_v33, 2  ;;  %v660_v55 = vpop.trf.xlu0 }
  0xbb   :  { %466 = vrcp.f32 %v132_v42  ;;  %vm236_vm15 = vcmp.lt.s32.totalorder %v234_v41, %v235_v43  ;;  %vm276_vm0 = vcmp.lt.s32.totalorder %v274_v50, %v275_v51  ;;  %v344_v53 = vrot.slane %v343_v34, 4 }
  0xbc   :  { %v176_v56 = vadd.f32 %v175_v48, %v174_v40  ;;  %v237_v7 = vsel %vm236_vm15, %v234_v41, %v235_v43  ;;  %468 = vpow2.f32 %v260_v44  ;;  %v277_v19 = vsel %vm276_vm0, %v274_v50, %v275_v51 }
  0xbd   :  { %v238_v57 = vrot.slane %v237_v7, 1  ;;  %470 = vpow2.f32 %v262_v45  ;;  %v278_v59 = vrot.slane %v277_v19, 4  ;;  %v301_v60 = vmax.f32 %v299_v33, %v300_v52  ;;  %v287_v33 = vld [vmem:[%s780_s1 + $0x4] sm:$0x1] }
  0xbe   :  { %v177_v61 = vrot.slane %v176_v56, 1  ;;  %v345_v63 = vmax.f32 %v343_v34, %v344_v53  ;;  %v389_v0 = vmax.f32 %v652_v36, %v660_v55  ;;  %vm292_vm11 = vcmp.lt.s32.totalorder %v669_v3, 256 }
  0xbf   :  { %v461_v1 = vpop.eup %460  ;;  %vm239_vm3 = vcmp.lt.s32.totalorder %v237_v7, %v238_v57  ;;  %vm279_vm4 = vcmp.lt.s32.totalorder %v277_v19, %v278_v59  ;;  %v302_v4 = vrot.slane %v301_v60, 1 }
  0xc0   :  { %v463_v5 = vpop.eup %462  ;;  %v109_v6 = vsel %vm108_vm9, %v461_v1, 0.0  ;;  %v178_v8 = vadd.f32 %v177_v61, %v176_v56  ;;  %v240_v9 = vsel %vm239_vm3, %v237_v7, %v238_v57  ;;  %v280_v11 = vsel %vm279_vm4, %v277_v19, %v278_v59 }
  0xc1   :  { %v465_v12 = vpop.eup %464  ;;  %110 = vst [vmem:[%s781_s2] sm:$0x1] %v109_v6  ;;  %vm242_vm6 = vcmp.eq.s32.totalorder %v240_v9, %v241_v62  ;;  %v281_v13 = vrot.slane %v280_v11, 2  ;;  %v303_v14 = vmax.f32 %v301_v60, %v302_v4  ;;  %v346_v15 = vrot.slane %v345_v63, 2 }
  0xc2   :  { %472 = vrcp.f32 %v178_v8  ;;  %v218_v17 = vadd.f32 %v465_v12, %v463_v5  ;;  %v442_v18 = vsel %vm242_vm6, 1.0, %v496_v16  ;;  %v390_v20 = vrot.slane %v389_v0, 4 }
  0xc3   :  { %v249_v22 = vsel %vm246_vm2, %v442_v18, 0.0  ;;  %vm282_vm9 = vcmp.lt.s32.totalorder %v280_v11, %v281_v13  ;;  %v304_v23 = vsub.f32 %v608_v35, %v303_v14  ;;  %v305_v49 = vsub.f32 %v617_v47, %v303_v14 }
  0xc4   :  { %v219_v58 = vrot.slane %v218_v17, 4  ;;  %250 = vst [vmem:[%s781_s2 + $0xb] sm:$0x1] %v249_v22  ;;  %v283_v25 = vsel %vm282_vm9, %v280_v11, %v281_v13  ;;  %vm318_vm7 = vcmp.ge.f32.partialorder %v608_v35, %v303_v14  ;;  %vm319_vm8 = vcmp.ge.f32.partialorder %v617_v47, %v303_v14  ;;  %v333_v13 = vld [vmem:[%s780_s1 + $0x5] sm:$0x1] }
  0xc5   :  { %v284_v26 = vrot.slane %v283_v25, 1  ;;  %v306_v27 = vmul.f32 1.442695, %v304_v23  ;;  %v308_v28 = vmul.f32 1.442695, %v305_v49  ;;  %v320_v29 = vsel %vm318_vm7, %v560_v24, 16 }
  0xc6   :  { %v220_v31 = vadd.f32 %v219_v58, %v218_v17  ;;  %v321_v34 = vsel %vm319_vm8, %v563_v30, 16  ;;  %v347_v37 = vmax.f32 %v345_v63, %v346_v15  ;;  %v391_v38 = vmax.f32 %v389_v0, %v390_v20 }
  0xc7   :  { %vm285_vm10 = vcmp.lt.s32.totalorder %v283_v25, %v284_v26  ;;  %474 = vpow2.f32 %v306_v27  ;;  %vm322_vm12 = vcmp.lt.s32.totalorder %v320_v29, %v321_v34  ;;  %v704_v19 = vadd.s32 5, %v575_v54 }
  0xc8   :  { %v467_v35 = vpop.eup %466  ;;  %v221_v47 = vrot.slane %v220_v31, 2  ;;  %v286_v39 = vsel %vm285_vm10, %v283_v25, %v284_v26  ;;  %476 = vpow2.f32 %v308_v28  ;;  %v323_v40 = vsel %vm322_vm12, %v320_v29, %v321_v34 }
  0xc9   :  { %v469_v41 = vpop.eup %468  ;;  %v155_v42 = vsel %vm154_vm1, %v467_v35, 0.0  ;;  %vm288_vm13 = vcmp.eq.s32.totalorder %v286_v39, %v287_v33  ;;  %v324_v43 = vrot.slane %v323_v40, 4  ;;  %v348_v44 = vrot.slane %v347_v37, 1 }
  0xca   :  { %v471_v45 = vpop.eup %470  ;;  %156 = vst [vmem:[%s781_s2 + $0x1] sm:$0x1] %v155_v42  ;;  %v222_v48 = vadd.f32 %v221_v47, %v220_v31  ;;  %v443_v50 = vsel %vm288_vm13, 1.0, %v496_v16  ;;  %v392_v51 = vrot.slane %v391_v38, 2  ;;  %vm338_vm4 = vcmp.lt.s32.totalorder %v704_v19, 256 }
  0xcb   :  { %v264_v52 = vadd.f32 %v471_v45, %v469_v41  ;;  %v295_v53 = vsel %vm292_vm11, %v443_v50, 0.0  ;;  %vm325_vm14 = vcmp.lt.s32.totalorder %v323_v40, %v324_v43  ;;  %v349_v56 = vmax.f32 %v347_v37, %v348_v44 }
  0xcc   :  { %v223_v10 = vrot.slane %v222_v48, 1  ;;  %296 = vst [vmem:[%s781_s2 + $0xc] sm:$0x1] %v295_v53  ;;  %v326_v7 = vsel %vm325_vm14, %v323_v40, %v324_v43  ;;  %v393_v57 = vmax.f32 %v391_v38, %v392_v51  ;;  %v734_v47 = vadd.s32 6, %v575_v54 }
  0xcd   :  { %v265_v59 = vrot.slane %v264_v52, 4  ;;  %v327_v60 = vrot.slane %v326_v7, 2  ;;  %v350_v61 = vsub.f32 %v628_v2, %v349_v56  ;;  %v351_v62 = vsub.f32 %v639_v21, %v349_v56 }
  0xce   :  { %v224_v63 = vadd.f32 %v223_v10, %v222_v48  ;;  %vm364_vm1 = vcmp.ge.f32.partialorder %v628_v2, %v349_v56  ;;  %vm365_vm15 = vcmp.ge.f32.partialorder %v639_v21, %v349_v56  ;;  %v394_v0 = vrot.slane %v393_v57, 1 }
  0xcf   :  { %v473_v1 = vpop.eup %472  ;;  %v266_v4 = vadd.f32 %v265_v59, %v264_v52  ;;  %vm328_vm0 = vcmp.lt.s32.totalorder %v326_v7, %v327_v60  ;;  %v352_v5 = vmul.f32 1.442695, %v350_v61  ;;  %v354_v6 = vmul.f32 1.442695, %v351_v62 }
  0xd0   :  { %v201_v8 = vsel %vm200_vm5, %v473_v1, 0.0  ;;  %478 = vrcp.f32 %v224_v63  ;;  %v329_v9 = vsel %vm328_vm0, %v326_v7, %v327_v60  ;;  %v366_v11 = vsel %vm364_vm1, %v560_v24, 16 }
  0xd1   :  { %202 = vst [vmem:[%s781_s2 + $0x2] sm:$0x1] %v201_v8  ;;  %v267_v2 = vrot.slane %v266_v4, 2  ;;  %v330_v12 = vrot.slane %v329_v9, 1  ;;  %480 = vpow2.f32 %v352_v5  ;;  %v367_v21 = vsel %vm365_vm15, %v563_v30, 16 }
  0xd2   :  { %482 = vpow2.f32 %v354_v6  ;;  %vm368_vm3 = vcmp.lt.s32.totalorder %v366_v11, %v367_v21  ;;  %v395_v46 = vmax.f32 %v393_v57, %v394_v0  ;;  %vm384_vm1 = vcmp.lt.s32.totalorder %v734_v47, 256  ;;  %v425_v0 = vld [vmem:[%s780_s1 + $0x7] sm:$0x1] }
  0xd3   :  { %v268_v14 = vadd.f32 %v267_v2, %v266_v4  ;;  %vm331_vm5 = vcmp.lt.s32.totalorder %v329_v9, %v330_v12  ;;  %v369_v15 = vsel %vm368_vm3, %v366_v11, %v367_v21  ;;  %v429_v60 = vadd.s32 7, %v575_v54 }
  0xd4   :  { %v475_v17 = vpop.eup %474  ;;  %v332_v18 = vsel %vm331_vm5, %v329_v9, %v330_v12  ;;  %v370_v20 = vrot.slane %v369_v15, 4  ;;  %v396_v22 = vsub.f32 %v652_v36, %v395_v46  ;;  %v397_v23 = vsub.f32 %v660_v55, %v395_v46 }
  0xd5   :  { %v477_v49 = vpop.eup %476  ;;  %v269_v58 = vrot.slane %v268_v14, 1  ;;  %vm334_vm6 = vcmp.eq.s32.totalorder %v332_v18, %v333_v13  ;;  %vm410_vm9 = vcmp.ge.f32.partialorder %v652_v36, %v395_v46  ;;  %vm411_vm7 = vcmp.ge.f32.partialorder %v660_v55, %v395_v46 }
  0xd6   :  { %v310_v25 = vadd.f32 %v477_v49, %v475_v17  ;;  %v444_v26 = vsel %vm334_vm6, 1.0, %v496_v16  ;;  %vm371_vm8 = vcmp.lt.s32.totalorder %v369_v15, %v370_v20  ;;  %v398_v27 = vmul.f32 1.442695, %v396_v22 }
  0xd7   :  { %v270_v28 = vadd.f32 %v269_v58, %v268_v14  ;;  %v341_v29 = vsel %vm338_vm4, %v444_v26, 0.0  ;;  %v372_v31 = vsel %vm371_vm8, %v369_v15, %v370_v20  ;;  %v400_v33 = vmul.f32 1.442695, %v397_v23 }
  0xd8   :  { %v311_v34 = vrot.slane %v310_v25, 4  ;;  %342 = vst [vmem:[%s781_s2 + $0xd] sm:$0x1] %v341_v29  ;;  %v373_v37 = vrot.slane %v372_v31, 2  ;;  %484 = vpow2.f32 %v398_v27  ;;  %v412_v36 = vsel %vm410_vm9, %v560_v24, 16 }
  0xd9   :  { %486 = vrcp.f32 %v270_v28  ;;  %v413_v55 = vsel %vm411_vm7, %v563_v30, 16  ;;  %v379_v24 = vld [vmem:[%s780_s1 + $0x6] sm:$0x1]  ;;  %vm430_vm3 = vcmp.lt.s32.totalorder %v429_v60, 256 }
  0xda   :  { %v312_v38 = vadd.f32 %v311_v34, %v310_v25  ;;  %vm374_vm10 = vcmp.lt.s32.totalorder %v372_v31, %v373_v37  ;;  %488 = vpow2.f32 %v400_v33  ;;  %vm414_vm12 = vcmp.lt.s32.totalorder %v412_v36, %v413_v55 }
  0xdb   :  { %v375_v35 = vsel %vm374_vm10, %v372_v31, %v373_v37  ;;  %v415_v39 = vsel %vm414_vm12, %v412_v36, %v413_v55 }
  0xdc   :  { %v313_v40 = vrot.slane %v312_v38, 2  ;;  %v376_v41 = vrot.slane %v375_v35, 1  ;;  %v416_v42 = vrot.slane %v415_v39, 4 }
  0xdd   :  { %v479_v43 = vpop.eup %478 }
  0xde   :  { %v481_v44 = vpop.eup %480  ;;  %v247_v30 = vsel %vm246_vm2, %v479_v43, 0.0  ;;  %v314_v45 = vadd.f32 %v313_v40, %v312_v38  ;;  %vm377_vm13 = vcmp.lt.s32.totalorder %v375_v35, %v376_v41  ;;  %vm417_vm14 = vcmp.lt.s32.totalorder %v415_v39, %v416_v42 }
  0xdf   :  { %v483_v48 = vpop.eup %482  ;;  %248 = vst [vmem:[%s781_s2 + $0x3] sm:$0x1] %v247_v30  ;;  %v378_v50 = vsel %vm377_vm13, %v375_v35, %v376_v41  ;;  %v418_v51 = vsel %vm417_vm14, %v415_v39, %v416_v42 }
  0xe0   :  { %v315_v52 = vrot.slane %v314_v45, 1  ;;  %v356_v53 = vadd.f32 %v483_v48, %v481_v44  ;;  %vm380_vm15 = vcmp.eq.s32.totalorder %v378_v50, %v379_v24  ;;  %v419_v56 = vrot.slane %v418_v51, 2 }
  0xe1   :  { %v445_v10 = vsel %vm380_vm15, 1.0, %v496_v16 }
  0xe2   :  { %v316_v32 = vadd.f32 %v315_v52, %v314_v45  ;;  %v357_v7 = vrot.slane %v356_v53, 4  ;;  %v387_v57 = vsel %vm384_vm1, %v445_v10, 0.0  ;;  %vm420_vm2 = vcmp.lt.s32.totalorder %v418_v51, %v419_v56 }
  0xe3   :  { %388 = vst [vmem:[%s781_s2 + $0xe] sm:$0x1] %v387_v57  ;;  %v421_v59 = vsel %vm420_vm2, %v418_v51, %v419_v56 }
  0xe4   :  { %490 = vrcp.f32 %v316_v32  ;;  %v358_v61 = vadd.f32 %v357_v7, %v356_v53  ;;  %v422_v62 = vrot.slane %v421_v59, 1 }
  0xe5   :  { %v485_v63 = vpop.eup %484 }
  0xe6   :  { %v487_v1 = vpop.eup %486  ;;  %v359_v4 = vrot.slane %v358_v61, 2  ;;  %vm423_vm0 = vcmp.lt.s32.totalorder %v421_v59, %v422_v62 }
  0xe7   :  { %v489_v5 = vpop.eup %488  ;;  %v293_v6 = vsel %vm292_vm11, %v487_v1, 0.0  ;;  %v424_v8 = vsel %vm423_vm0, %v421_v59, %v422_v62 }
  0xe8   :  { %294 = vst [vmem:[%s781_s2 + $0x4] sm:$0x1] %v293_v6  ;;  %v360_v54 = vadd.f32 %v359_v4, %v358_v61  ;;  %v402_v9 = vadd.f32 %v489_v5, %v485_v63  ;;  %vm426_vm5 = vcmp.eq.s32.totalorder %v424_v8, %v425_v0 }
  0xe9   :  { %v446_v11 = vsel %vm426_vm5, 1.0, %v496_v16 }
  0xea   :  { %v361_v2 = vrot.slane %v360_v54, 1  ;;  %v403_v12 = vrot.slane %v402_v9, 4  ;;  %v433_v21 = vsel %vm430_vm3, %v446_v11, 0.0 }
  0xeb   :  { %434 = vst [vmem:[%s781_s2 + $0xf] sm:$0x1] %v433_v21 }
  0xec   :  { %v362_v3 = vadd.f32 %v361_v2, %v360_v54  ;;  %v404_v13 = vadd.f32 %v403_v12, %v402_v9 }
  0xee   :  { %492 = vrcp.f32 %v362_v3  ;;  %v405_v46 = vrot.slane %v404_v13, 2 }
  0xf0   :  { %v406_v14 = vadd.f32 %v405_v46, %v404_v13 }
  0xf1   :  { %v491_v15 = vpop.eup %490 }
  0xf2   :  { %v339_v17 = vsel %vm338_vm4, %v491_v15, 0.0  ;;  %v407_v18 = vrot.slane %v406_v14, 1 }
  0xf3   :  { %340 = vst [vmem:[%s781_s2 + $0x5] sm:$0x1] %v339_v17 }
  0xf4   :  { %v408_v16 = vadd.f32 %v407_v18, %v406_v14 }
  0xf6   :  { %494 = vrcp.f32 %v408_v16 }
  0xfb   :  { %v493_v20 = vpop.eup %492 }
  0xfc   :  { %v385_v22 = vsel %vm384_vm1, %v493_v20, 0.0 }
  0xfd   :  { %386 = vst [vmem:[%s781_s2 + $0x6] sm:$0x1] %v385_v22 }
 0x103   :  { %v495_v23 = vpop.eup %494 }
 0x104   :  { %v431_v49 = vsel %vm430_vm3, %v495_v23, 0.0 }
 0x105   :  { %432 = vst [vmem:[%s781_s2 + $0x7] sm:$0x1] %v431_v49 }

// kernel: adaptive_ece.3
= control target key start
LH: loop header
LB: loop body
LE: loop exit
PB: predicated region body
PF: predicated region fallthrough
CT: control target
= control target key end

     0   :  { %v13_v0 = vlaneseq  ;;  %v928_v1 = vmov 0   ;;  %v929_v38 = vmov 1.0   ;;  %s1079_s1 = inlined_call_operand.vmem [shape: f32[16,1], index: 1, kind: input, shape index: {}]   ;;  %s1080_s0 = inlined_call_operand.vmem [shape: f32[16,128], index: 0, kind: input, shape index: {}]   ;;  %s1081_s2 = inlined_call_operand.vmem [shape: f32[1,8,16,3], index: 2, kind: output, shape index: {}]  }
   0x1   :  { %927 = vset.pattern.permute.xlu0 %v928_v1  ;;  %v11_v2 = vld [vmem:[%s1079_s1] sm:$0xff]  ;;  %v12_v4 = vld [vmem:[%s1079_s1 + $0x8] sm:$0xff] }
   0x2   :  { %v799_v3 = vld [vmem:[%s1080_s0] ss:$0 sm:$0xff]  ;;  %23 = vperm.xlu0 %927, %v11_v2   ;;  %v14_v5 = vshrl.u32 %v13_v0, 7  ;;  %v802_v6 = vld [vmem:[%s1080_s0 + $0x8] ss:$0 sm:$0xff] }
   0x3   :  { %v805_v7 = vld [vmem:[%s1080_s0 + $0x1] ss:$0 sm:$0xff]  ;;  %v808_v8 = vld [vmem:[%s1080_s0 + $0x9] ss:$0 sm:$0xff]  ;;  %v813_v9 = vld [vmem:[%s1080_s0 + $0x2] ss:$0 sm:$0xff] }
   0x4   :  { %v816_v10 = vld [vmem:[%s1080_s0 + $0xa] ss:$0 sm:$0xff]  ;;  %vm37_vm0 = vcmp.eq.s32.totalorder %v14_v5, 0  ;;  %vm38_vm1 = vcmp.eq.s32.totalorder %v14_v5, 1  ;;  %v821_v11 = vld [vmem:[%s1080_s0 + $0x3] ss:$0 sm:$0xff] }
   0x5   :  { %v824_v12 = vld [vmem:[%s1080_s0 + $0xb] ss:$0 sm:$0xff]  ;;  %v43_v13 = vsel %vm38_vm1, %v799_v3, %v802_v6  ;;  %v139_v14 = vsel %vm38_vm1, %v805_v7, %v808_v8  ;;  %v235_v15 = vsel %vm38_vm1, %v813_v9, %v816_v10  ;;  %v829_v17 = vld [vmem:[%s1080_s0 + $0x4] ss:$0 sm:$0xff]  ;;  %v832_v18 = vld [vmem:[%s1080_s0 + $0xc] ss:$0 sm:$0xff] }
   0x6   :  { %v331_v16 = vsel %vm38_vm1, %v821_v11, %v824_v12  ;;  %v837_v19 = vld [vmem:[%s1080_s0 + $0x5] ss:$0 sm:$0xff]  ;;  %28 = vperm.xlu0 %927, %v12_v4   ;;  %v44_v20 = vsel %vm37_vm0, 1.0, %v43_v13  ;;  %v140_v21 = vsel %vm37_vm0, 1.0, %v139_v14  ;;  %v236_v22 = vsel %vm37_vm0, 1.0, %v235_v15 }
   0x7   :  { %v332_v23 = vsel %vm37_vm0, 1.0, %v331_v16  ;;  %v840_v24 = vld [vmem:[%s1080_s0 + $0xd] ss:$0 sm:$0xff]  ;;  %885 = vmatprep.subr.mxu0 %v44_v20  ;;  %890 = vmatprep.subr.mxu1 %v140_v21  ;;  %v427_v25 = vsel %vm38_vm1, %v829_v17, %v832_v18  ;;  %v845_v29 = vld [vmem:[%s1080_s0 + $0x6] ss:$0 sm:$0xff] }
   0x8   :  { %v523_v26 = vsel %vm38_vm1, %v837_v19, %v840_v24  ;;  %886 = vmatpush3.xpose.msra.mxu0 %v44_v20  ;;  %891 = vmatpush3.xpose.msra.mxu1 %v140_v21  ;;  %v428_v27 = vsel %vm37_vm0, 1.0, %v427_v25  ;;  %v848_v30 = vld [vmem:[%s1080_s0 + $0xe] ss:$0 sm:$0xff]  ;;  %v853_v31 = vld [vmem:[%s1080_s0 + $0x7] ss:$0 sm:$0xff] }
   0x9   :  { %v524_v28 = vsel %vm37_vm0, 1.0, %v523_v26  ;;  %895 = vmatprep.subr.mxu0 %v236_v22  ;;  %900 = vmatprep.subr.mxu1 %v332_v23  ;;  %v856_v32 = vld [vmem:[%s1080_s0 + $0xf] ss:$0 sm:$0xff]  ;;  %v619_v33 = vsel %vm38_vm1, %v845_v29, %v848_v30 }
   0xa   :  { %v715_v34 = vsel %vm38_vm1, %v853_v31, %v856_v32  ;;  %v620_v35 = vsel %vm37_vm0, 1.0, %v619_v33 }
   0xb   :  { %v716_v36 = vsel %vm37_vm0, 1.0, %v715_v34 }
  0x7d   :  { %v24_v37 = vpop.permute.xlu0 %23 }
  0x7e   :  { %vm31_vm2 = vcmp.gt.f32.partialorder %v799_v3, %v24_v37  ;;  %vm129_vm3 = vcmp.gt.f32.partialorder %v805_v7, %v24_v37  ;;  %vm225_vm6 = vcmp.gt.f32.partialorder %v813_v9, %v24_v37  ;;  %vm321_vm7 = vcmp.gt.f32.partialorder %v821_v11, %v24_v37 }
  0x7f   :  { %887 = vmatprep.mubr.msk.f32.mxu0 %vm31_vm2, %v929_v38  ;;  %892 = vmatprep.mubr.msk.f32.mxu1 %vm129_vm3, %v929_v38  ;;  %vm417_vm10 = vcmp.gt.f32.partialorder %v829_v17, %v24_v37  ;;  %vm513_vm11 = vcmp.gt.f32.partialorder %v837_v19, %v24_v37  ;;  %vm609_vm14 = vcmp.gt.f32.partialorder %v845_v29, %v24_v37  ;;  %vm120_vm2 = vcmask 23552  }
  0x80   :  { %vm705_vm15 = vcmp.gt.f32.partialorder %v853_v31, %v24_v37 }
  0x81   :  { %v29_v39 = vpop.permute.xlu0 %28 }
  0x82   :  { %vm32_vm4 = vcmp.gt.f32.partialorder %v799_v3, %v29_v39  ;;  %vm130_vm5 = vcmp.gt.f32.partialorder %v805_v7, %v29_v39  ;;  %vm226_vm8 = vcmp.gt.f32.partialorder %v813_v9, %v29_v39  ;;  %vm322_vm9 = vcmp.gt.f32.partialorder %v821_v11, %v29_v39 }
  0x83   :  { %888 = vmatmul.mubr.msk.f32.vlgmr.msra.gmra.mxu0 %vm32_vm4, %v929_v38  ;;  %893 = vmatmul.mubr.msk.f32.vlgmr.msra.gmra.mxu1 %vm130_vm5, %v929_v38  ;;  %vm418_vm12 = vcmp.gt.f32.partialorder %v829_v17, %v29_v39  ;;  %vm514_vm13 = vcmp.gt.f32.partialorder %v837_v19, %v29_v39  ;;  %vm610_vm0 = vcmp.gt.f32.partialorder %v845_v29, %v29_v39 }
  0x84   :  { %896 = vmatpush3.xpose.msra.mxu0 %v236_v22  ;;  %901 = vmatpush3.xpose.msra.mxu1 %v332_v23  ;;  %vm706_vm1 = vcmp.gt.f32.partialorder %v853_v31, %v29_v39 }
  0x85   :  { %897 = vmatprep.mubr.msk.f32.mxu0 %vm225_vm6, %v929_v38  ;;  %902 = vmatprep.mubr.msk.f32.mxu1 %vm321_vm7, %v929_v38 }
  0x86   :  { %905 = vmatprep.subr.mxu0 %v428_v27  ;;  %910 = vmatprep.subr.mxu1 %v524_v28 }
  0x87   :  { %898 = vmatmul.mubr.msk.f32.vlgmr.msra.gmra.mxu0 %vm226_vm8, %v929_v38  ;;  %903 = vmatmul.mubr.msk.f32.vlgmr.msra.gmra.mxu1 %vm322_vm9, %v929_v38 }
  0x88   :  { %906 = vmatpush3.xpose.msra.mxu0 %v428_v27  ;;  %911 = vmatpush3.xpose.msra.mxu1 %v524_v28 }
  0x89   :  { %907 = vmatprep.mubr.msk.f32.mxu0 %vm417_vm10, %v929_v38  ;;  %912 = vmatprep.mubr.msk.f32.mxu1 %vm513_vm11, %v929_v38 }
  0x8a   :  { %915 = vmatprep.subr.mxu0 %v620_v35  ;;  %920 = vmatprep.subr.mxu1 %v716_v36 }
  0x8b   :  { %908 = vmatmul.mubr.msk.f32.vlgmr.msra.gmra.mxu0 %vm418_vm12, %v929_v38  ;;  %913 = vmatmul.mubr.msk.f32.vlgmr.msra.gmra.mxu1 %vm514_vm13, %v929_v38 }
  0x8c   :  { %916 = vmatpush3.xpose.msra.mxu0 %v620_v35  ;;  %921 = vmatpush3.xpose.msra.mxu1 %v716_v36 }
  0x8d   :  { %917 = vmatprep.mubr.msk.f32.mxu0 %vm609_vm14, %v929_v38  ;;  %922 = vmatprep.mubr.msk.f32.mxu1 %vm705_vm15, %v929_v38 }
  0x8f   :  { %918 = vmatmul.mubr.msk.f32.vlgmr.msra.gmra.mxu0 %vm610_vm0, %v929_v38  ;;  %923 = vmatmul.mubr.msk.f32.vlgmr.msra.gmra.mxu1 %vm706_vm1, %v929_v38 }
 0x143   :  { %v889_v40 = vpop.f32.mrf.mxu0  ;;  %v894_v41 = vpop.f32.mrf.mxu1 }
 0x144   :  { %122 = vst.msk [vmem:[%s1081_s2 + $0x8] sm:$0xff] %vm120_vm2, %v889_v40  ;;  %812 = vst.msk [vmem:[%s1081_s2 + $0x18] sm:$0xff] %vm120_vm2, %v894_v41 }
 0x145   :  { %v111_v42 = vpop.f32.mrf.mxu0  ;;  %v207_v43 = vpop.f32.mrf.mxu1 }
 0x146   :  { %121 = vst.msk [vmem:[%s1081_s2] sm:$0xff] %vm120_vm2, %v111_v42  ;;  %811 = vst.msk [vmem:[%s1081_s2 + $0x10] sm:$0xff] %vm120_vm2, %v207_v43 }
 0x147   :  { %v899_v44 = vpop.f32.mrf.mxu0  ;;  %v904_v45 = vpop.f32.mrf.mxu1 }
 0x148   :  { %820 = vst.msk [vmem:[%s1081_s2 + $0x28] sm:$0xff] %vm120_vm2, %v899_v44  ;;  %828 = vst.msk [vmem:[%s1081_s2 + $0x38] sm:$0xff] %vm120_vm2, %v904_v45 }
 0x149   :  { %v303_v46 = vpop.f32.mrf.mxu0  ;;  %v399_v47 = vpop.f32.mrf.mxu1 }
 0x14a   :  { %819 = vst.msk [vmem:[%s1081_s2 + $0x20] sm:$0xff] %vm120_vm2, %v303_v46  ;;  %827 = vst.msk [vmem:[%s1081_s2 + $0x30] sm:$0xff] %vm120_vm2, %v399_v47 }
 0x14b   :  { %v909_v48 = vpop.f32.mrf.mxu0  ;;  %v914_v49 = vpop.f32.mrf.mxu1 }
 0x14c   :  { %836 = vst.msk [vmem:[%s1081_s2 + $0x48] sm:$0xff] %vm120_vm2, %v909_v48  ;;  %844 = vst.msk [vmem:[%s1081_s2 + $0x58] sm:$0xff] %vm120_vm2, %v914_v49 }
 0x14d   :  { %v495_v50 = vpop.f32.mrf.mxu0  ;;  %v591_v51 = vpop.f32.mrf.mxu1 }
 0x14e   :  { %835 = vst.msk [vmem:[%s1081_s2 + $0x40] sm:$0xff] %vm120_vm2, %v495_v50  ;;  %843 = vst.msk [vmem:[%s1081_s2 + $0x50] sm:$0xff] %vm120_vm2, %v591_v51 }
 0x14f   :  { %v919_v52 = vpop.f32.mrf.mxu0  ;;  %v924_v53 = vpop.f32.mrf.mxu1 }
 0x150   :  { %852 = vst.msk [vmem:[%s1081_s2 + $0x68] sm:$0xff] %vm120_vm2, %v919_v52  ;;  %860 = vst.msk [vmem:[%s1081_s2 + $0x78] sm:$0xff] %vm120_vm2, %v924_v53 }
 0x151   :  { %v687_v54 = vpop.f32.mrf.mxu0  ;;  %v783_v55 = vpop.f32.mrf.mxu1 }
 0x152   :  { %851 = vst.msk [vmem:[%s1081_s2 + $0x60] sm:$0xff] %vm120_vm2, %v687_v54  ;;  %859 = vst.msk [vmem:[%s1081_s2 + $0x70] sm:$0xff] %vm120_vm2, %v783_v55 }

</bundles_post_ra>
